<compile_context>
chip_gen: v7x
topology: tpu7x:2x2x1
jax: 0.10.0
libtpu: 0.0.40
codegen_flags: <defaults>
</compile_context>

<pallas_src>
import math
from functools import partial

import jax
import jax.numpy as jnp
from jax.experimental import pallas as pl
from jax.experimental.pallas import tpu as pltpu


# ---------------------------------------------------------------------------
# helpers
# ---------------------------------------------------------------------------
def _round_up(x, m):
  return ((x + m - 1) // m) * m


def _pick_row_tile(n, cap=512):
  """Largest multiple of 8 that divides n, capped; fall back to n itself."""
  if n <= cap:
    return n
  t = cap - (cap % 8)
  while t >= 8:
    if n % t == 0:
      return t
    t -= 8
  return n


def _vmem_limit_bytes():
  """~3/4 of physical VMEM: 96 MiB on v5e/v6e (128 MiB), 48 MiB on v7x (64 MiB)."""
  try:
    cap = int(pltpu.get_tpu_info().vmem_capacity_bytes)
  except Exception:
    cap = 64 * 1024 * 1024
  return int(min(cap - cap // 4, 100 * 1024 * 1024))


# ---------------------------------------------------------------------------
# kernel 1: fused LayerNorm + QKV projection (q/k/v as separate bf16 outputs)
# ---------------------------------------------------------------------------
def _ln_qkv_kernel(x_ref, g_ref, b_ref, w_ref, wb_ref, q_ref, k_ref, v_ref,
                   *, eps, d):
  x = x_ref[...]                                          # (TM, D) f32
  mean = jnp.mean(x, axis=-1, keepdims=True)
  xc = x - mean
  var = jnp.mean(xc * xc, axis=-1, keepdims=True)
  y = (xc * jax.lax.rsqrt(var + eps)) * g_ref[...] + b_ref[...]   # (TM, D) f32
  # bf16 MXU operands, f32 accumulation; bias added in f32.
  qkv = jnp.dot(y.astype(jnp.bfloat16), w_ref[...],
                preferred_element_type=jnp.float32) + wb_ref[...]  # (TM, 3D) f32
  q_ref[...] = qkv[:, :d].astype(q_ref.dtype)
  k_ref[...] = qkv[:, d:2 * d].astype(k_ref.dtype)
  v_ref[...] = qkv[:, 2 * d:].astype(v_ref.dtype)


# ---------------------------------------------------------------------------
# kernel 2: flash attention (heads in-kernel) + fused out_proj epilogue
# ---------------------------------------------------------------------------
def _flash_attn_kernel(pad_ref, q_ref, k_ref, v_ref, wo_ref, bo_ref, o_ref,
                       m_sc, l_sc, acc_sc, *, num_heads, head_dim):
  ki = pl.program_id(2)
  H, HD = num_heads, head_dim
  f32 = jnp.float32
  bf16 = jnp.bfloat16

  @pl.when(ki == 0)
  def _():
    m_sc[...] = jnp.full(m_sc.shape, -1e30, f32)
    l_sc[...] = jnp.zeros(l_sc.shape, f32)
    acc_sc[...] = jnp.zeros(acc_sc.shape, f32)

  q = q_ref[0]                                            # (TQ, D) bf16
  k = k_ref[0]                                            # (TK, D) bf16
  v = v_ref[0]                                            # (TK, D) bf16
  neg_bias = pad_ref[0] * jnp.float32(-1e30)              # (1, TK) f32, 1.0 = padded key

  dn_qk = (((1,), (1,)), ((), ()))                        # contract head-dim of q and k

  for h in range(H):                                      # static unroll over heads
    hs, he = h * HD, (h + 1) * HD
    s = jax.lax.dot_general(q[:, hs:he], k[:, hs:he], dn_qk,
                            preferred_element_type=f32)   # (TQ, TK) f32
    s = s + neg_bias
    m_prev = m_sc[h]                                      # (TQ, 1)
    m_new = jnp.maximum(m_prev, jnp.max(s, axis=-1, keepdims=True))
    alpha = jnp.exp(m_prev - m_new)                       # (TQ, 1)
    p = jnp.exp(s - m_new)                                # (TQ, TK) f32
    l_sc[h] = alpha * l_sc[h] + jnp.sum(p, axis=-1, keepdims=True)
    pv = jnp.dot(p.astype(bf16), v[:, hs:he],
                 preferred_element_type=f32)              # (TQ, HD) f32
    acc_sc[:, hs:he] = alpha * acc_sc[:, hs:he] + pv
    m_sc[h] = m_new

  @pl.when(ki == pl.num_programs(2) - 1)
  def _():
    # normalize each head, then fused output projection (temperature folded in wo).
    for h in range(H):
      hs, he = h * HD, (h + 1) * HD
      inv_l = pl.reciprocal(l_sc[h], approx=True)         # (TQ, 1), EUP
      acc_sc[:, hs:he] = acc_sc[:, hs:he] * inv_l
    out = jnp.dot(acc_sc[...].astype(bf16), wo_ref[...],
                  preferred_element_type=f32) + bo_ref[...]   # (TQ, D) f32
    o_ref[0] = out.astype(o_ref.dtype)


# ---------------------------------------------------------------------------
# wrapper
# ---------------------------------------------------------------------------
def mhsa_forward(inputs, paddings, ln_scale, ln_bias, w_in, b_in, qs_scale,
                 w_out, b_out, *, num_heads, ln_eps=1e-6,
                 attention_temperature=1.0):
  """Eval-mode forward of MultiHeadedSelfAttention.

  inputs:   (B, T, D) f32
  paddings: (B, T)    f32, 1.0 = padded frame
  ln_scale, ln_bias: (D,)   LayerNorm params (module applies 1 + scale)
  w_in: (D, 3D), b_in: (3D,)  in_proj (jax convention y = x @ W + b)
  qs_scale: (D // num_heads,) QueryScaler param
  w_out: (D, D), b_out: (D,)  out_proj
  """
  B, T, D = inputs.shape
  H = num_heads
  assert D % H == 0
  HD = D // H

  f32 = jnp.float32
  bf16 = jnp.bfloat16

  # --- fold QueryScaler and 1/sqrt(HD) into the q columns of in_proj (exact) ---
  r_softplus_0 = 1.442695041
  qscale = r_softplus_0 * jax.nn.softplus(qs_scale.astype(f32)) / math.sqrt(HD)
  col_scale = jnp.concatenate([jnp.tile(qscale, H), jnp.ones((2 * D,), f32)])
  w_in_f = (w_in.astype(f32) * col_scale[None, :]).astype(bf16)      # (D, 3D) bf16
  b_in_f = (b_in.astype(f32) * col_scale).reshape(1, 3 * D)          # f32

  # --- fold attention_temperature into out_proj weight (exact) ---
  w_out_f = (w_out.astype(f32) * f32(attention_temperature)).astype(bf16)  # (D, D) bf16
  b_out_f = b_out.astype(f32).reshape(1, D)

  g2d = (1.0 + ln_scale.astype(f32)).reshape(1, D)
  beta2d = ln_bias.astype(f32).reshape(1, D)

  # --- pad T so the q/kv tiles divide it; extra keys are masked, extra queries sliced off ---
  if T >= 256:
    TS = 256
  else:
    TS = _round_up(T, 8)
  T_pad = _round_up(T, TS)

  x = inputs.astype(f32)
  pads = paddings.astype(f32)
  if T_pad != T:
    x = jnp.pad(x, ((0, 0), (0, T_pad - T), (0, 0)))
    pads = jnp.pad(pads, ((0, 0), (0, T_pad - T)), constant_values=1.0)

  N = B * T_pad
  x2d = x.reshape(N, D)
  TM = _pick_row_tile(N, cap=512)
  vmem_limit = _vmem_limit_bytes()

  # ---------------- kernel 1: LayerNorm + QKV projection ----------------
  q2d, k2d, v2d = pl.pallas_call(
      partial(_ln_qkv_kernel, eps=ln_eps, d=D),
      out_shape=(jax.ShapeDtypeStruct((N, D), bf16),
                 jax.ShapeDtypeStruct((N, D), bf16),
                 jax.ShapeDtypeStruct((N, D), bf16)),
      grid=(N // TM,),
      in_specs=[
          pl.BlockSpec((TM, D), lambda i: (i, 0)),        # x rows
          pl.BlockSpec((1, D), lambda i: (0, 0)),         # 1 + ln_scale
          pl.BlockSpec((1, D), lambda i: (0, 0)),         # ln_bias
          pl.BlockSpec((D, 3 * D), lambda i: (0, 0)),     # in_proj weight (bf16, resident)
          pl.BlockSpec((1, 3 * D), lambda i: (0, 0)),     # in_proj bias (f32)
      ],
      out_specs=[
          pl.BlockSpec((TM, D), lambda i: (i, 0)),
          pl.BlockSpec((TM, D), lambda i: (i, 0)),
          pl.BlockSpec((TM, D), lambda i: (i, 0)),
      ],
      compiler_params=pltpu.CompilerParams(
          dimension_semantics=("parallel",),
          vmem_limit_bytes=vmem_limit),
  )(x2d, g2d, beta2d, w_in_f, b_in_f)

  # Free reshapes (leading-dim split of contiguous row-major arrays); no transposes.
  q3 = q2d.reshape(B, T_pad, D)
  k3 = k2d.reshape(B, T_pad, D)
  v3 = v2d.reshape(B, T_pad, D)
  pad3 = pads.reshape(B, 1, T_pad)

  TQ = TK = TS

  # ---------------- kernel 2: flash attention + fused out_proj ----------------
  out3 = pl.pallas_call(
      partial(_flash_attn_kernel, num_heads=H, head_dim=HD),
      out_shape=jax.ShapeDtypeStruct((B, T_pad, D), f32),
      grid=(B, T_pad // TQ, T_pad // TK),
      in_specs=[
          pl.BlockSpec((1, 1, TK), lambda b, qi, ki: (b, 0, ki)),   # paddings
          pl.BlockSpec((1, TQ, D), lambda b, qi, ki: (b, qi, 0)),   # q (lane-dense)
          pl.BlockSpec((1, TK, D), lambda b, qi, ki: (b, ki, 0)),   # k
          pl.BlockSpec((1, TK, D), lambda b, qi, ki: (b, ki, 0)),   # v
          pl.BlockSpec((D, D), lambda b, qi, ki: (0, 0)),           # out_proj weight
          pl.BlockSpec((1, D), lambda b, qi, ki: (0, 0)),           # out_proj bias
      ],
      out_specs=pl.BlockSpec((1, TQ, D), lambda b, qi, ki: (b, qi, 0)),
      scratch_shapes=[
          pltpu.VMEM((H, TQ, 1), f32),     # running max, per head
          pltpu.VMEM((H, TQ, 1), f32),     # running denom, per head
          pltpu.VMEM((TQ, D), f32),        # running weighted sum, heads concatenated
      ],
      compiler_params=pltpu.CompilerParams(
          dimension_semantics=("parallel", "parallel", "arbitrary"),
          vmem_limit_bytes=vmem_limit),
  )(pad3, q3, k3, v3, w_out_f, b_out_f)

  out = out3 if T_pad == T else out3[:, :T, :]
  # Residual dropout is identity in eval mode.
  return out


# ---------------------------------------------------------------------------
# pure-JAX reference (transcription of the PyTorch forward, eval mode)
# ---------------------------------------------------------------------------
def _reference(inputs, paddings, ln_scale, ln_bias, w_in, b_in, qs_scale,
               w_out, b_out, *, num_heads, ln_eps=1e-6,
               attention_temperature=1.0):
  B, T, D = inputs.shape
  H = num_heads
  HD = D // H
  hp = jax.lax.Precision.HIGHEST

  mean = jnp.mean(inputs, axis=-1, keepdims=True)
  var = jnp.mean(jnp.square(inputs - mean), axis=-1, keepdims=True)
  xn = (inputs - mean) * jax.lax.rsqrt(var + ln_eps) * (1.0 + ln_scale) + ln_bias

  qkv = jnp.dot(xn, w_in, precision=hp) + b_in
  q, k, v = jnp.split(qkv, 3, axis=-1)

  r_softplus_0 = 1.442695041
  qscale = r_softplus_0 * jax.nn.softplus(qs_scale)
  q = (q.reshape(B, T, H, HD) * qscale).transpose(0, 2, 1, 3)
  k = k.reshape(B, T, H, HD).transpose(0, 2, 1, 3)
  v = v.reshape(B, T, H, HD).transpose(0, 2, 1, 3)

  scores = jnp.einsum("bhqd,bhkd->bhqk", q, k, precision=hp) / math.sqrt(HD)
  key_pad = (paddings > 0.5)[:, None, None, :]            # True = padded
  scores = jnp.where(key_pad, -1e30, scores)
  probs = jax.nn.softmax(scores, axis=-1)
  out = jnp.einsum("bhqk,bhkd->bhqd", probs, v, precision=hp)
  out = out.transpose(0, 2, 1, 3).reshape(B, T, D)
  out = out * attention_temperature
  out = jnp.dot(out, w_out, precision=hp) + b_out
  return out


if __name__ == "__main__":
  # Small config consistent with the module: batch=2, seq=16, encoder_dim=64, heads=2.
  B, T, D, H = 2, 16, 64, 2
  HD = D // H
  temperature = 1.0        # ConformerConfig default
  ln_eps = 1e-6

  key = jax.random.PRNGKey(0)
  keys = jax.random.split(key, 8)

  inputs = jax.random.normal(keys[0], (B, T, D), dtype=jnp.float32)

  pad = jnp.zeros((B, T), dtype=jnp.float32)
  pad = pad.at[0, T - 4:].set(1.0)
  pad = pad.at[1, T - 1:].set(1.0)

  ln_scale = 0.1 * jax.random.normal(keys[1], (D,), dtype=jnp.float32)
  ln_bias = 0.1 * jax.random.normal(keys[2], (D,), dtype=jnp.float32)
  w_in = 0.1 * jax.random.normal(keys[3], (D, 3 * D), dtype=jnp.float32)
  b_in = 0.05 * jax.random.normal(keys[4], (3 * D,), dtype=jnp.float32)
  qs_scale = 0.1 * jax.random.normal(keys[5], (HD,), dtype=jnp.float32)
  w_out = 0.1 * jax.random.normal(keys[6], (D, D), dtype=jnp.float32)
  b_out = 0.05 * jax.random.normal(keys[7], (D,), dtype=jnp.float32)

  fwd = jax.jit(partial(mhsa_forward, num_heads=H, ln_eps=ln_eps,
                        attention_temperature=temperature))
  out = fwd(inputs, pad, ln_scale, ln_bias, w_in, b_in, qs_scale, w_out, b_out)
  jax.block_until_ready(out)

  ref = _reference(inputs, pad, ln_scale, ln_bias, w_in, b_in, qs_scale,
                   w_out, b_out, num_heads=H, ln_eps=ln_eps,
                   attention_temperature=temperature)
  jax.block_until_ready(ref)

  assert out.shape == (B, T, D)
  assert jnp.all(jnp.isfinite(out)), "non-finite values in kernel output"
  # Tolerance accounts for bf16 MXU operands (f32 accumulation) vs the f32/HIGHEST reference.
  assert jnp.allclose(out, ref, atol=5e-2, rtol=5e-2), (
      "MHSA kernel output mismatch vs reference: "
      f"max abs err = {float(jnp.max(jnp.abs(out - ref)))}")

  print("KERNEL_OK")
</pallas_src>

<mosaic_0001>
module attributes {stable_mosaic.version = 11 : i64} {
  func.func @_ln_qkv_kernel(%arg0: i32, %arg1: memref<32x64xf32, #tpu.memory_space<vmem>>, %arg2: memref<1x64xf32, #tpu.memory_space<vmem>>, %arg3: memref<1x64xf32, #tpu.memory_space<vmem>>, %arg4: memref<64x192xbf16, #tpu.memory_space<vmem>>, %arg5: memref<1x192xf32, #tpu.memory_space<vmem>>, %arg6: memref<32x64xbf16, #tpu.memory_space<vmem>>, %arg7: memref<32x64xbf16, #tpu.memory_space<vmem>>, %arg8: memref<32x64xbf16, #tpu.memory_space<vmem>>) attributes {dimension_semantics = [#tpu.dimension_semantics<parallel>], iteration_bounds = array<i64: 1>, scalar_prefetch = 0 : i64, scratch_operands = 0 : i64, tpu.core_type = #tpu.core_type<tc>, window_params = [{transform_indices = @transform_0, window_bounds = array<i64: 32, 64>}, {pipeline_mode = #tpu.pipeline_mode<synchronous>, transform_indices = @transform_1, window_bounds = array<i64: 1, 64>}, {pipeline_mode = #tpu.pipeline_mode<synchronous>, transform_indices = @transform_2, window_bounds = array<i64: 1, 64>}, {pipeline_mode = #tpu.pipeline_mode<synchronous>, transform_indices = @transform_3, window_bounds = array<i64: 64, 192>}, {pipeline_mode = #tpu.pipeline_mode<synchronous>, transform_indices = @transform_4, window_bounds = array<i64: 1, 192>}, {transform_indices = @transform_5, window_bounds = array<i64: 32, 64>}, {transform_indices = @transform_6, window_bounds = array<i64: 32, 64>}, {transform_indices = @transform_7, window_bounds = array<i64: 32, 64>}]} {
    %c0 = arith.constant 0 : index
    %c0_0 = arith.constant 0 : index
    %0 = vector.load %arg1[%c0, %c0_0] : memref<32x64xf32, #tpu.memory_space<vmem>>, vector<32x64xf32>
    %cst = arith.constant dense<0.000000e+00> : vector<32xf32>
    %1 = vector.multi_reduction <add>, %0, %cst [1] : vector<32x64xf32> to vector<32xf32>
    %2 = vector.shape_cast %1 : vector<32xf32> to vector<32x1xf32>
    %cst_1 = arith.constant 6.400000e+01 : f32
    %3 = vector.broadcast %cst_1 : f32 to vector<32x1xf32>
    %4 = arith.divf %2, %3 : vector<32x1xf32>
    %5 = vector.broadcast %4 : vector<32x1xf32> to vector<32x64xf32>
    %6 = arith.subf %0, %5 : vector<32x64xf32>
    %7 = arith.mulf %6, %6 : vector<32x64xf32>
    %cst_2 = arith.constant dense<0.000000e+00> : vector<32xf32>
    %8 = vector.multi_reduction <add>, %7, %cst_2 [1] : vector<32x64xf32> to vector<32xf32>
    %9 = vector.shape_cast %8 : vector<32xf32> to vector<32x1xf32>
    %cst_3 = arith.constant 6.400000e+01 : f32
    %10 = vector.broadcast %cst_3 : f32 to vector<32x1xf32>
    %11 = arith.divf %9, %10 : vector<32x1xf32>
    %cst_4 = arith.constant 9.99999997E-7 : f32
    %12 = vector.broadcast %cst_4 : f32 to vector<32x1xf32>
    %13 = arith.addf %11, %12 : vector<32x1xf32>
    %14 = math.rsqrt %13 : vector<32x1xf32>
    %15 = vector.broadcast %14 : vector<32x1xf32> to vector<32x64xf32>
    %16 = arith.mulf %6, %15 : vector<32x64xf32>
    %c0_5 = arith.constant 0 : index
    %c0_6 = arith.constant 0 : index
    %17 = vector.load %arg2[%c0_5, %c0_6] : memref<1x64xf32, #tpu.memory_space<vmem>>, vector<1x64xf32>
    %18 = vector.broadcast %17 : vector<1x64xf32> to vector<32x64xf32>
    %19 = arith.mulf %16, %18 : vector<32x64xf32>
    %c0_7 = arith.constant 0 : index
    %c0_8 = arith.constant 0 : index
    %20 = vector.load %arg3[%c0_7, %c0_8] : memref<1x64xf32, #tpu.memory_space<vmem>>, vector<1x64xf32>
    %21 = vector.broadcast %20 : vector<1x64xf32> to vector<32x64xf32>
    %22 = arith.addf %19, %21 : vector<32x64xf32>
    %23 = arith.truncf %22 : vector<32x64xf32> to vector<32x64xbf16>
    %c0_9 = arith.constant 0 : index
    %c0_10 = arith.constant 0 : index
    %24 = vector.load %arg4[%c0_9, %c0_10] : memref<64x192xbf16, #tpu.memory_space<vmem>>, vector<64x192xbf16>
    %cst_11 = arith.constant dense<0.000000e+00> : vector<32x192xf32>
    %25 = tpu.matmul %23, %24, %cst_11 {dimension_numbers = #tpu.dot_dimension_numbers<[1], [0], [0], [1], [0, 0, 1, 1], [], []>} : vector<32x64xbf16>, vector<64x192xbf16>, vector<32x192xf32> -> vector<32x192xf32>
    %c0_12 = arith.constant 0 : index
    %c0_13 = arith.constant 0 : index
    %26 = vector.load %arg5[%c0_12, %c0_13] : memref<1x192xf32, #tpu.memory_space<vmem>>, vector<1x192xf32>
    %27 = vector.broadcast %26 : vector<1x192xf32> to vector<32x192xf32>
    %28 = arith.addf %25, %27 : vector<32x192xf32>
    %29 = vector.extract_strided_slice %28 {offsets = [0, 0], sizes = [32, 64], strides = [1, 1]} : vector<32x192xf32> to vector<32x64xf32>
    %30 = arith.truncf %29 : vector<32x64xf32> to vector<32x64xbf16>
    %c0_14 = arith.constant 0 : index
    %c0_15 = arith.constant 0 : index
    %31 = vector.load %arg6[%c0_14, %c0_15] : memref<32x64xbf16, #tpu.memory_space<vmem>>, vector<32x64xbf16>
    tpu.vector_store %arg6[%c0_14, %c0_15], %30 {strides = array<i32>} : memref<32x64xbf16, #tpu.memory_space<vmem>>, vector<32x64xbf16>,
    %32 = vector.extract_strided_slice %28 {offsets = [0, 64], sizes = [32, 64], strides = [1, 1]} : vector<32x192xf32> to vector<32x64xf32>
    %33 = arith.truncf %32 : vector<32x64xf32> to vector<32x64xbf16>
    %c0_16 = arith.constant 0 : index
    %c0_17 = arith.constant 0 : index
    %34 = vector.load %arg7[%c0_16, %c0_17] : memref<32x64xbf16, #tpu.memory_space<vmem>>, vector<32x64xbf16>
    tpu.vector_store %arg7[%c0_16, %c0_17], %33 {strides = array<i32>} : memref<32x64xbf16, #tpu.memory_space<vmem>>, vector<32x64xbf16>,
    %35 = vector.extract_strided_slice %28 {offsets = [0, 128], sizes = [32, 64], strides = [1, 1]} : vector<32x192xf32> to vector<32x64xf32>
    %36 = arith.truncf %35 : vector<32x64xf32> to vector<32x64xbf16>
    %c0_18 = arith.constant 0 : index
    %c0_19 = arith.constant 0 : index
    %37 = vector.load %arg8[%c0_18, %c0_19] : memref<32x64xbf16, #tpu.memory_space<vmem>>, vector<32x64xbf16>
    tpu.vector_store %arg8[%c0_18, %c0_19], %36 {strides = array<i32>} : memref<32x64xbf16, #tpu.memory_space<vmem>>, vector<32x64xbf16>,
    return
  }
  func.func @transform_0(%arg0: i32) -> (i32, i32) {
    %c0_i32 = arith.constant 0 : i32
    %c0_i32_0 = arith.constant 0 : i32
    return %arg0, %c0_i32 : i32, i32
  }
  func.func @transform_1(%arg0: i32) -> (i32, i32) {
    %c0_i32 = arith.constant 0 : i32
    %c0_i32_0 = arith.constant 0 : i32
    %c0_i32_1 = arith.constant 0 : i32
    return %c0_i32, %c0_i32_0 : i32, i32
  }
  func.func @transform_2(%arg0: i32) -> (i32, i32) {
    %c0_i32 = arith.constant 0 : i32
    %c0_i32_0 = arith.constant 0 : i32
    %c0_i32_1 = arith.constant 0 : i32
    return %c0_i32, %c0_i32_0 : i32, i32
  }
  func.func @transform_3(%arg0: i32) -> (i32, i32) {
    %c0_i32 = arith.constant 0 : i32
    %c0_i32_0 = arith.constant 0 : i32
    %c0_i32_1 = arith.constant 0 : i32
    return %c0_i32, %c0_i32_0 : i32, i32
  }
  func.func @transform_4(%arg0: i32) -> (i32, i32) {
    %c0_i32 = arith.constant 0 : i32
    %c0_i32_0 = arith.constant 0 : i32
    %c0_i32_1 = arith.constant 0 : i32
    return %c0_i32, %c0_i32_0 : i32, i32
  }
  func.func @transform_5(%arg0: i32) -> (i32, i32) {
    %c0_i32 = arith.constant 0 : i32
    %c0_i32_0 = arith.constant 0 : i32
    return %arg0, %c0_i32 : i32, i32
  }
  func.func @transform_6(%arg0: i32) -> (i32, i32) {
    %c0_i32 = arith.constant 0 : i32
    %c0_i32_0 = arith.constant 0 : i32
    return %arg0, %c0_i32 : i32, i32
  }
  func.func @transform_7(%arg0: i32) -> (i32, i32) {
    %c0_i32 = arith.constant 0 : i32
    %c0_i32_0 = arith.constant 0 : i32
    return %arg0, %c0_i32 : i32, i32
  }
}

module attributes {stable_mosaic.version = 11 : i64} {
  func.func @_flash_attn_kernel(%arg0: i32, %arg1: i32, %arg2: i32, %arg3: memref<1x1x16xf32, #tpu.memory_space<vmem>>, %arg4: memref<1x16x64xbf16, #tpu.memory_space<vmem>>, %arg5: memref<1x16x64xbf16, #tpu.memory_space<vmem>>, %arg6: memref<1x16x64xbf16, #tpu.memory_space<vmem>>, %arg7: memref<64x64xbf16, #tpu.memory_space<vmem>>, %arg8: memref<1x64xf32, #tpu.memory_space<vmem>>, %arg9: memref<1x16x64xf32, #tpu.memory_space<vmem>>, %arg10: memref<2x16x1xf32, #tpu.memory_space<vmem>>, %arg11: memref<2x16x1xf32, #tpu.memory_space<vmem>>, %arg12: memref<16x64xf32, #tpu.memory_space<vmem>>) attributes {dimension_semantics = [#tpu.dimension_semantics<parallel>, #tpu.dimension_semantics<parallel>, #tpu.dimension_semantics<arbitrary>], iteration_bounds = array<i64: 2, 1, 1>, scalar_prefetch = 0 : i64, scratch_operands = 3 : i64, tpu.core_type = #tpu.core_type<tc>, window_params = [{transform_indices = @transform_0, window_bounds = array<i64: 1, 1, 16>}, {transform_indices = @transform_1, window_bounds = array<i64: 1, 16, 64>}, {transform_indices = @transform_2, window_bounds = array<i64: 1, 16, 64>}, {transform_indices = @transform_3, window_bounds = array<i64: 1, 16, 64>}, {pipeline_mode = #tpu.pipeline_mode<synchronous>, transform_indices = @transform_4, window_bounds = array<i64: 64, 64>}, {pipeline_mode = #tpu.pipeline_mode<synchronous>, transform_indices = @transform_5, window_bounds = array<i64: 1, 64>}, {transform_indices = @transform_6, window_bounds = array<i64: 1, 16, 64>}]} {
    %c0_i32 = arith.constant 0 : i32
    %0 = arith.cmpi eq, %arg2, %c0_i32 : i32
    %1 = arith.extui %0 : i1 to i32
    %c0_i32_0 = arith.constant 0 : i32
    %2 = arith.cmpi ne, %1, %c0_i32_0 : i32
    scf.if %2 {
      %cst_52 = arith.constant -1.000000e+30 : f32
      %86 = vector.broadcast %cst_52 : f32 to vector<2x16x1xf32>
      %c0_53 = arith.constant 0 : index
      %c0_54 = arith.constant 0 : index
      %c0_55 = arith.constant 0 : index
      %87 = vector.load %arg10[%c0_53, %c0_54, %c0_55] : memref<2x16x1xf32, #tpu.memory_space<vmem>>, vector<2x16x1xf32>
      tpu.vector_store %arg10[%c0_53, %c0_54, %c0_55], %86 {strides = array<i32>} : memref<2x16x1xf32, #tpu.memory_space<vmem>>, vector<2x16x1xf32>,
      %cst_56 = arith.constant 0.000000e+00 : f32
      %88 = vector.broadcast %cst_56 : f32 to vector<2x16x1xf32>
      %c0_57 = arith.constant 0 : index
      %c0_58 = arith.constant 0 : index
      %c0_59 = arith.constant 0 : index
      %89 = vector.load %arg11[%c0_57, %c0_58, %c0_59] : memref<2x16x1xf32, #tpu.memory_space<vmem>>, vector<2x16x1xf32>
      tpu.vector_store %arg11[%c0_57, %c0_58, %c0_59], %88 {strides = array<i32>} : memref<2x16x1xf32, #tpu.memory_space<vmem>>, vector<2x16x1xf32>,
      %cst_60 = arith.constant 0.000000e+00 : f32
      %90 = vector.broadcast %cst_60 : f32 to vector<16x64xf32>
      %c0_61 = arith.constant 0 : index
      %c0_62 = arith.constant 0 : index
      %91 = vector.load %arg12[%c0_61, %c0_62] : memref<16x64xf32, #tpu.memory_space<vmem>>, vector<16x64xf32>
      tpu.vector_store %arg12[%c0_61, %c0_62], %90 {strides = array<i32>} : memref<16x64xf32, #tpu.memory_space<vmem>>, vector<16x64xf32>,
    } else {
    }
    %c0 = arith.constant 0 : index
    %c0_1 = arith.constant 0 : index
    %c0_2 = arith.constant 0 : index
    %3 = vector.load %arg4[%c0, %c0_1, %c0_2] : memref<1x16x64xbf16, #tpu.memory_space<vmem>>, vector<1x16x64xbf16>
    %4 = vector.shape_cast %3 : vector<1x16x64xbf16> to vector<16x64xbf16>
    %c0_3 = arith.constant 0 : index
    %c0_4 = arith.constant 0 : index
    %c0_5 = arith.constant 0 : index
    %5 = vector.load %arg5[%c0_3, %c0_4, %c0_5] : memref<1x16x64xbf16, #tpu.memory_space<vmem>>, vector<1x16x64xbf16>
    %6 = vector.shape_cast %5 : vector<1x16x64xbf16> to vector<16x64xbf16>
    %c0_6 = arith.constant 0 : index
    %c0_7 = arith.constant 0 : index
    %c0_8 = arith.constant 0 : index
    %7 = vector.load %arg6[%c0_6, %c0_7, %c0_8] : memref<1x16x64xbf16, #tpu.memory_space<vmem>>, vector<1x16x64xbf16>
    %8 = vector.shape_cast %7 : vector<1x16x64xbf16> to vector<16x64xbf16>
    %c0_9 = arith.constant 0 : index
    %c0_10 = arith.constant 0 : index
    %c0_11 = arith.constant 0 : index
    %9 = vector.load %arg3[%c0_9, %c0_10, %c0_11] : memref<1x1x16xf32, #tpu.memory_space<vmem>>, vector<1x1x16xf32>
    %10 = vector.shape_cast %9 : vector<1x1x16xf32> to vector<1x16xf32>
    %cst = arith.constant -1.000000e+30 : f32
    %11 = vector.broadcast %cst : f32 to vector<1x16xf32>
    %12 = arith.mulf %10, %11 : vector<1x16xf32>
    %13 = vector.extract_strided_slice %4 {offsets = [0, 0], sizes = [16, 32], strides = [1, 1]} : vector<16x64xbf16> to vector<16x32xbf16>
    %14 = vector.extract_strided_slice %6 {offsets = [0, 0], sizes = [16, 32], strides = [1, 1]} : vector<16x64xbf16> to vector<16x32xbf16>
    %cst_12 = arith.constant dense<0.000000e+00> : vector<16x16xf32>
    %15 = tpu.matmul %13, %14, %cst_12 {dimension_numbers = #tpu.dot_dimension_numbers<[1], [1], [0], [0], [0, 0, 1, 0], [], []>} : vector<16x32xbf16>, vector<16x32xbf16>, vector<16x16xf32> -> vector<16x16xf32>
    %16 = vector.broadcast %12 : vector<1x16xf32> to vector<16x16xf32>
    %17 = arith.addf %15, %16 : vector<16x16xf32>
    %c0_13 = arith.constant 0 : index
    %c0_14 = arith.constant 0 : index
    %c0_15 = arith.constant 0 : index
    %18 = vector.load %arg10[%c0_13, %c0_14, %c0_15] : memref<2x16x1xf32, #tpu.memory_space<vmem>>, vector<1x16x1xf32>
    %19 = vector.shape_cast %18 : vector<1x16x1xf32> to vector<16x1xf32>
    %cst_16 = arith.constant dense<0xFF800000> : vector<16xf32>
    %20 = vector.multi_reduction <maximumf>, %17, %cst_16 [1] : vector<16x16xf32> to vector<16xf32>
    %21 = vector.shape_cast %20 : vector<16xf32> to vector<16x1xf32>
    %22 = arith.maximumf %19, %21 : vector<16x1xf32>
    %23 = arith.subf %19, %22 : vector<16x1xf32>
    %24 = math.exp %23 : vector<16x1xf32>
    %25 = vector.broadcast %22 : vector<16x1xf32> to vector<16x16xf32>
    %26 = arith.subf %17, %25 : vector<16x16xf32>
    %27 = math.exp %26 : vector<16x16xf32>
    %c0_17 = arith.constant 0 : index
    %c0_18 = arith.constant 0 : index
    %c0_19 = arith.constant 0 : index
    %28 = vector.load %arg11[%c0_17, %c0_18, %c0_19] : memref<2x16x1xf32, #tpu.memory_space<vmem>>, vector<1x16x1xf32>
    %29 = vector.shape_cast %28 : vector<1x16x1xf32> to vector<16x1xf32>
    %30 = arith.mulf %24, %29 : vector<16x1xf32>
    %cst_20 = arith.constant dense<0.000000e+00> : vector<16xf32>
    %31 = vector.multi_reduction <add>, %27, %cst_20 [1] : vector<16x16xf32> to vector<16xf32>
    %32 = vector.shape_cast %31 : vector<16xf32> to vector<16x1xf32>
    %33 = arith.addf %30, %32 : vector<16x1xf32>
    %c0_21 = arith.constant 0 : index
    %c0_22 = arith.constant 0 : index
    %c0_23 = arith.constant 0 : index
    %34 = vector.load %arg11[%c0_21, %c0_22, %c0_23] : memref<2x16x1xf32, #tpu.memory_space<vmem>>, vector<1x16x1xf32>
    %35 = vector.shape_cast %34 : vector<1x16x1xf32> to vector<16x1xf32>
    %36 = vector.shape_cast %33 : vector<16x1xf32> to vector<1x16x1xf32>
    tpu.vector_store %arg11[%c0_21, %c0_22, %c0_23], %36 {strides = array<i32>} : memref<2x16x1xf32, #tpu.memory_space<vmem>>, vector<1x16x1xf32>,
    %37 = arith.truncf %27 : vector<16x16xf32> to vector<16x16xbf16>
    %38 = vector.extract_strided_slice %8 {offsets = [0, 0], sizes = [16, 32], strides = [1, 1]} : vector<16x64xbf16> to vector<16x32xbf16>
    %cst_24 = arith.constant dense<0.000000e+00> : vector<16x32xf32>
    %39 = tpu.matmul %37, %38, %cst_24 {dimension_numbers = #tpu.dot_dimension_numbers<[1], [0], [0], [1], [0, 0, 1, 1], [], []>} : vector<16x16xbf16>, vector<16x32xbf16>, vector<16x32xf32> -> vector<16x32xf32>
    %c0_25 = arith.constant 0 : index
    %c0_26 = arith.constant 0 : index
    %40 = vector.load %arg12[%c0_25, %c0_26] : memref<16x64xf32, #tpu.memory_space<vmem>>, vector<16x32xf32>
    %41 = vector.broadcast %24 : vector<16x1xf32> to vector<16x32xf32>
    %42 = arith.mulf %41, %40 : vector<16x32xf32>
    %43 = arith.addf %42, %39 : vector<16x32xf32>
    %c0_27 = arith.constant 0 : index
    %c0_28 = arith.constant 0 : index
    %44 = vector.load %arg12[%c0_27, %c0_28] : memref<16x64xf32, #tpu.memory_space<vmem>>, vector<16x32xf32>
    tpu.vector_store %arg12[%c0_27, %c0_28], %43 {strides = array<i32>} : memref<16x64xf32, #tpu.memory_space<vmem>>, vector<16x32xf32>,
    %c0_29 = arith.constant 0 : index
    %c0_30 = arith.constant 0 : index
    %c0_31 = arith.constant 0 : index
    %45 = vector.load %arg10[%c0_29, %c0_30, %c0_31] : memref<2x16x1xf32, #tpu.memory_space<vmem>>, vector<1x16x1xf32>
    %46 = vector.shape_cast %45 : vector<1x16x1xf32> to vector<16x1xf32>
    %47 = vector.shape_cast %22 : vector<16x1xf32> to vector<1x16x1xf32>
    tpu.vector_store %arg10[%c0_29, %c0_30, %c0_31], %47 {strides = array<i32>} : memref<2x16x1xf32, #tpu.memory_space<vmem>>, vector<1x16x1xf32>,
    %48 = vector.extract_strided_slice %4 {offsets = [0, 32], sizes = [16, 32], strides = [1, 1]} : vector<16x64xbf16> to vector<16x32xbf16>
    %49 = vector.extract_strided_slice %6 {offsets = [0, 32], sizes = [16, 32], strides = [1, 1]} : vector<16x64xbf16> to vector<16x32xbf16>
    %cst_32 = arith.constant dense<0.000000e+00> : vector<16x16xf32>
    %50 = tpu.matmul %48, %49, %cst_32 {dimension_numbers = #tpu.dot_dimension_numbers<[1], [1], [0], [0], [0, 0, 1, 0], [], []>} : vector<16x32xbf16>, vector<16x32xbf16>, vector<16x16xf32> -> vector<16x16xf32>
    %51 = vector.broadcast %12 : vector<1x16xf32> to vector<16x16xf32>
    %52 = arith.addf %50, %51 : vector<16x16xf32>
    %c1 = arith.constant 1 : index
    %c0_33 = arith.constant 0 : index
    %c0_34 = arith.constant 0 : index
    %53 = vector.load %arg10[%c1, %c0_33, %c0_34] : memref<2x16x1xf32, #tpu.memory_space<vmem>>, vector<1x16x1xf32>
    %54 = vector.shape_cast %53 : vector<1x16x1xf32> to vector<16x1xf32>
    %cst_35 = arith.constant dense<0xFF800000> : vector<16xf32>
    %55 = vector.multi_reduction <maximumf>, %52, %cst_35 [1] : vector<16x16xf32> to vector<16xf32>
    %56 = vector.shape_cast %55 : vector<16xf32> to vector<16x1xf32>
    %57 = arith.maximumf %54, %56 : vector<16x1xf32>
    %58 = arith.subf %54, %57 : vector<16x1xf32>
    %59 = math.exp %58 : vector<16x1xf32>
    %60 = vector.broadcast %57 : vector<16x1xf32> to vector<16x16xf32>
    %61 = arith.subf %52, %60 : vector<16x16xf32>
    %62 = math.exp %61 : vector<16x16xf32>
    %c1_36 = arith.constant 1 : index
    %c0_37 = arith.constant 0 : index
    %c0_38 = arith.constant 0 : index
    %63 = vector.load %arg11[%c1_36, %c0_37, %c0_38] : memref<2x16x1xf32, #tpu.memory_space<vmem>>, vector<1x16x1xf32>
    %64 = vector.shape_cast %63 : vector<1x16x1xf32> to vector<16x1xf32>
    %65 = arith.mulf %59, %64 : vector<16x1xf32>
    %cst_39 = arith.constant dense<0.000000e+00> : vector<16xf32>
    %66 = vector.multi_reduction <add>, %62, %cst_39 [1] : vector<16x16xf32> to vector<16xf32>
    %67 = vector.shape_cast %66 : vector<16xf32> to vector<16x1xf32>
    %68 = arith.addf %65, %67 : vector<16x1xf32>
    %c1_40 = arith.constant 1 : index
    %c0_41 = arith.constant 0 : index
    %c0_42 = arith.constant 0 : index
    %69 = vector.load %arg11[%c1_40, %c0_41, %c0_42] : memref<2x16x1xf32, #tpu.memory_space<vmem>>, vector<1x16x1xf32>
    %70 = vector.shape_cast %69 : vector<1x16x1xf32> to vector<16x1xf32>
    %71 = vector.shape_cast %68 : vector<16x1xf32> to vector<1x16x1xf32>
    tpu.vector_store %arg11[%c1_40, %c0_41, %c0_42], %71 {strides = array<i32>} : memref<2x16x1xf32, #tpu.memory_space<vmem>>, vector<1x16x1xf32>,
    %72 = arith.truncf %62 : vector<16x16xf32> to vector<16x16xbf16>
    %73 = vector.extract_strided_slice %8 {offsets = [0, 32], sizes = [16, 32], strides = [1, 1]} : vector<16x64xbf16> to vector<16x32xbf16>
    %cst_43 = arith.constant dense<0.000000e+00> : vector<16x32xf32>
    %74 = tpu.matmul %72, %73, %cst_43 {dimension_numbers = #tpu.dot_dimension_numbers<[1], [0], [0], [1], [0, 0, 1, 1], [], []>} : vector<16x16xbf16>, vector<16x32xbf16>, vector<16x32xf32> -> vector<16x32xf32>
    %c0_44 = arith.constant 0 : index
    %c32 = arith.constant 32 : index
    %75 = vector.load %arg12[%c0_44, %c32] : memref<16x64xf32, #tpu.memory_space<vmem>>, vector<16x32xf32>
    %76 = vector.broadcast %59 : vector<16x1xf32> to vector<16x32xf32>
    %77 = arith.mulf %76, %75 : vector<16x32xf32>
    %78 = arith.addf %77, %74 : vector<16x32xf32>
    %c0_45 = arith.constant 0 : index
    %c32_46 = arith.constant 32 : index
    %79 = vector.load %arg12[%c0_45, %c32_46] : memref<16x64xf32, #tpu.memory_space<vmem>>, vector<16x32xf32>
    tpu.vector_store %arg12[%c0_45, %c32_46], %78 {strides = array<i32>} : memref<16x64xf32, #tpu.memory_space<vmem>>, vector<16x32xf32>,
    %c1_47 = arith.constant 1 : index
    %c0_48 = arith.constant 0 : index
    %c0_49 = arith.constant 0 : index
    %80 = vector.load %arg10[%c1_47, %c0_48, %c0_49] : memref<2x16x1xf32, #tpu.memory_space<vmem>>, vector<1x16x1xf32>
    %81 = vector.shape_cast %80 : vector<1x16x1xf32> to vector<16x1xf32>
    %82 = vector.shape_cast %57 : vector<16x1xf32> to vector<1x16x1xf32>
    tpu.vector_store %arg10[%c1_47, %c0_48, %c0_49], %82 {strides = array<i32>} : memref<2x16x1xf32, #tpu.memory_space<vmem>>, vector<1x16x1xf32>,
    %c0_i32_50 = arith.constant 0 : i32
    %83 = arith.cmpi eq, %arg2, %c0_i32_50 : i32
    %84 = arith.extui %83 : i1 to i32
    %c0_i32_51 = arith.constant 0 : i32
    %85 = arith.cmpi ne, %84, %c0_i32_51 : i32
    scf.if %85 {
      %c0_52 = arith.constant 0 : index
      %c0_53 = arith.constant 0 : index
      %c0_54 = arith.constant 0 : index
      %86 = vector.load %arg11[%c0_52, %c0_53, %c0_54] : memref<2x16x1xf32, #tpu.memory_space<vmem>>, vector<1x16x1xf32>
      %87 = vector.shape_cast %86 : vector<1x16x1xf32> to vector<16x1xf32>
      %88 = tpu.reciprocal %87 {approx = true} : vector<16x1xf32> -> vector<16x1xf32>
      %c0_55 = arith.constant 0 : index
      %c0_56 = arith.constant 0 : index
      %89 = vector.load %arg12[%c0_55, %c0_56] : memref<16x64xf32, #tpu.memory_space<vmem>>, vector<16x32xf32>
      %90 = vector.broadcast %88 : vector<16x1xf32> to vector<16x32xf32>
      %91 = arith.mulf %89, %90 : vector<16x32xf32>
      %c0_57 = arith.constant 0 : index
      %c0_58 = arith.constant 0 : index
      %92 = vector.load %arg12[%c0_57, %c0_58] : memref<16x64xf32, #tpu.memory_space<vmem>>, vector<16x32xf32>
      tpu.vector_store %arg12[%c0_57, %c0_58], %91 {strides = array<i32>} : memref<16x64xf32, #tpu.memory_space<vmem>>, vector<16x32xf32>,
      %c1_59 = arith.constant 1 : index
      %c0_60 = arith.constant 0 : index
      %c0_61 = arith.constant 0 : index
      %93 = vector.load %arg11[%c1_59, %c0_60, %c0_61] : memref<2x16x1xf32, #tpu.memory_space<vmem>>, vector<1x16x1xf32>
      %94 = vector.shape_cast %93 : vector<1x16x1xf32> to vector<16x1xf32>
      %95 = tpu.reciprocal %94 {approx = true} : vector<16x1xf32> -> vector<16x1xf32>
      %c0_62 = arith.constant 0 : index
      %c32_63 = arith.constant 32 : index
      %96 = vector.load %arg12[%c0_62, %c32_63] : memref<16x64xf32, #tpu.memory_space<vmem>>, vector<16x32xf32>
      %97 = vector.broadcast %95 : vector<16x1xf32> to vector<16x32xf32>
      %98 = arith.mulf %96, %97 : vector<16x32xf32>
      %c0_64 = arith.constant 0 : index
      %c32_65 = arith.constant 32 : index
      %99 = vector.load %arg12[%c0_64, %c32_65] : memref<16x64xf32, #tpu.memory_space<vmem>>, vector<16x32xf32>
      tpu.vector_store %arg12[%c0_64, %c32_65], %98 {strides = array<i32>} : memref<16x64xf32, #tpu.memory_space<vmem>>, vector<16x32xf32>,
      %c0_66 = arith.constant 0 : index
      %c0_67 = arith.constant 0 : index
      %100 = vector.load %arg12[%c0_66, %c0_67] : memref<16x64xf32, #tpu.memory_space<vmem>>, vector<16x64xf32>
      %101 = arith.truncf %100 : vector<16x64xf32> to vector<16x64xbf16>
      %c0_68 = arith.constant 0 : index
      %c0_69 = arith.constant 0 : index
      %102 = vector.load %arg7[%c0_68, %c0_69] : memref<64x64xbf16, #tpu.memory_space<vmem>>, vector<64x64xbf16>
      %cst_70 = arith.constant dense<0.000000e+00> : vector<16x64xf32>
      %103 = tpu.matmul %101, %102, %cst_70 {dimension_numbers = #tpu.dot_dimension_numbers<[1], [0], [0], [1], [0, 0, 1, 1], [], []>} : vector<16x64xbf16>, vector<64x64xbf16>, vector<16x64xf32> -> vector<16x64xf32>
      %c0_71 = arith.constant 0 : index
      %c0_72 = arith.constant 0 : index
      %104 = vector.load %arg8[%c0_71, %c0_72] : memref<1x64xf32, #tpu.memory_space<vmem>>, vector<1x64xf32>
      %105 = vector.broadcast %104 : vector<1x64xf32> to vector<16x64xf32>
      %106 = arith.addf %103, %105 : vector<16x64xf32>
      %c0_73 = arith.constant 0 : index
      %c0_74 = arith.constant 0 : index
      %c0_75 = arith.constant 0 : index
      %107 = vector.load %arg9[%c0_73, %c0_74, %c0_75] : memref<1x16x64xf32, #tpu.memory_space<vmem>>, vector<1x16x64xf32>
      %108 = vector.shape_cast %107 : vector<1x16x64xf32> to vector<16x64xf32>
      %109 = vector.shape_cast %106 : vector<16x64xf32> to vector<1x16x64xf32>
      tpu.vector_store %arg9[%c0_73, %c0_74, %c0_75], %109 {strides = array<i32>} : memref<1x16x64xf32, #tpu.memory_space<vmem>>, vector<1x16x64xf32>,
    } else {
    }
    return
  }
  func.func @transform_0(%arg0: i32, %arg1: i32, %arg2: i32) -> (i32, i32, i32) {
    %c0_i32 = arith.constant 0 : i32
    %c0_i32_0 = arith.constant 0 : i32
    return %arg0, %c0_i32, %arg2 : i32, i32, i32
  }
  func.func @transform_1(%arg0: i32, %arg1: i32, %arg2: i32) -> (i32, i32, i32) {
    %c0_i32 = arith.constant 0 : i32
    %c0_i32_0 = arith.constant 0 : i32
    return %arg0, %arg1, %c0_i32 : i32, i32, i32
  }
  func.func @transform_2(%arg0: i32, %arg1: i32, %arg2: i32) -> (i32, i32, i32) {
    %c0_i32 = arith.constant 0 : i32
    %c0_i32_0 = arith.constant 0 : i32
    return %arg0, %arg2, %c0_i32 : i32, i32, i32
  }
  func.func @transform_3(%arg0: i32, %arg1: i32, %arg2: i32) -> (i32, i32, i32) {
    %c0_i32 = arith.constant 0 : i32
    %c0_i32_0 = arith.constant 0 : i32
    return %arg0, %arg2, %c0_i32 : i32, i32, i32
  }
  func.func @transform_4(%arg0: i32, %arg1: i32, %arg2: i32) -> (i32, i32) {
    %c0_i32 = arith.constant 0 : i32
    %c0_i32_0 = arith.constant 0 : i32
    %c0_i32_1 = arith.constant 0 : i32
    return %c0_i32, %c0_i32_0 : i32, i32
  }
  func.func @transform_5(%arg0: i32, %arg1: i32, %arg2: i32) -> (i32, i32) {
    %c0_i32 = arith.constant 0 : i32
    %c0_i32_0 = arith.constant 0 : i32
    %c0_i32_1 = arith.constant 0 : i32
    return %c0_i32, %c0_i32_0 : i32, i32
  }
  func.func @transform_6(%arg0: i32, %arg1: i32, %arg2: i32) -> (i32, i32, i32) {
    %c0_i32 = arith.constant 0 : i32
    %c0_i32_0 = arith.constant 0 : i32
    return %arg0, %arg1, %c0_i32 : i32, i32, i32
  }
}

</mosaic_0001>

<bundles_post_ra>
// kernel: tile.9
= control target key start
LH: loop header
LB: loop body
LE: loop exit
PB: predicated region body
PF: predicated region fallthrough
CT: control target
= control target key end

     0   :  { %vm7_vm0 = vcmask 261120   ;;  %vm13_vm1 = vcmask 523520   ;;  %s39_s0 = inlined_call_operand.vmem [shape: f32[2,32], index: 0, kind: input, shape index: {}]   ;;  %s40_s1 = inlined_call_operand.vmem [shape: f32[64], index: 1, kind: output, shape index: {}]  }
   0x1   :  { %v4_v0 = vld [vmem:[%s39_s0] sm:$0x3]  ;;  %s22_s0 = smov 32  }
   0x2   :  { %5 = vst [vmem:[#allocation1] sm:$0x3] %v4_v0 }
   0x9   :  { %v10_v1 = vld [vmem:[#allocation1 + $0x1] sm:$0x1]   ;;  %v6_v2 = vld [vmem:[#allocation1] sm:$0x1]  }
   0xa   :  { %11 = vrot.lane.b32.xlu0 %v10_v1, %s22_s0  ;;  %8 = vst.msk [vmem:[#allocation0] sm:$0x1] %vm7_vm0, %v6_v2  }
  0x7c   :  { %v12_v3 = vpop.permute.xlu0 %11  }
  0x7d   :  { %14 = vst.msk [vmem:[#allocation0] sm:$0x1] %vm13_vm1, %v12_v3  }
  0x84   :  { %v18_v4 = vld [vmem:[#allocation0] sm:$0x1] }
  0x85   :  { %20 = vst [vmem:[%s40_s1] sm:$0x1] %v18_v4 }

// kernel: tile.8
= control target key start
LH: loop header
LB: loop body
LE: loop exit
PB: predicated region body
PF: predicated region fallthrough
CT: control target
= control target key end

     0   :  { %s22_s0 = inlined_call_operand.vmem [shape: f32[32], index: 0, kind: input, shape index: {}]   ;;  %s23_s1 = inlined_call_operand.vmem [shape: f32[2,32], index: 1, kind: output, shape index: {}]  }
   0x1   :  { %v4_v0 = vld [vmem:[%s22_s0] ss:$0 sm:$0xff] }
   0x2   :  { %5 = vst [vmem:[%s23_s1] sm:$0x3] %v4_v0 }

// kernel: mhsa_forward.2
= control target key start
LH: loop header
LB: loop body
LE: loop exit
PB: predicated region body
PF: predicated region fallthrough
CT: control target
= control target key end

     0   :  { %vm28_vm0 = vcmask 523264   ;;  %v352_v36 = vmov 0   ;;  %vm241_vm1 = vcmask 519168   ;;  %s517_s0 = inlined_call_operand.vmem [shape: f32[32,64], index: 0, kind: input, shape index: {}]   ;;  %s518_s3 = inlined_call_operand.vmem [shape: bf16[64,192], index: 3, kind: input, shape index: {}]   ;;  %s519_s1 = inlined_call_operand.vmem [shape: f32[1,64], index: 1, kind: input, shape index: {}]   ;;  %s520_s2 = inlined_call_operand.vmem [shape: f32[1,64], index: 2, kind: input, shape index: {}]   ;;  %s521_s4 = inlined_call_operand.vmem [shape: f32[1,192], index: 4, kind: input, shape index: {}]   ;;  %s522_s5 = inlined_call_operand.vmem [shape: bf16[32,64], index: 5, kind: output, shape index: {0}]   ;;  %s523_s7 = inlined_call_operand.vmem [shape: bf16[32,64], index: 7, kind: output, shape index: {2}]   ;;  %s524_s6 = inlined_call_operand.vmem [shape: bf16[32,64], index: 6, kind: output, shape index: {1}]  }
   0x1   :  { %v24_v0 = vld [vmem:[%s517_s0] sm:$0xff]  ;;  %v26_v1 = vld [vmem:[%s517_s0 + $0x10] sm:$0xff]  ;;  %v25_v2 = vld [vmem:[%s517_s0 + $0x8] sm:$0xff]  ;;  %204 = vmatprep.mubr.bf16.mxu0 %v352_v36  ;;  %214 = vmatprep.mubr.bf16.mxu1 %v352_v36 }
   0x2   :  { %v29_v3 = vsel %vm28_vm0, %v24_v0, 0.0  ;;  %v35_v4 = vsel %vm28_vm0, %v26_v1, 0.0  ;;  %v27_v5 = vld [vmem:[%s517_s0 + $0x18] sm:$0xff]  ;;  %v32_v6 = vsel %vm28_vm0, %v25_v2, 0.0  ;;  %v332_v28 = vld [vmem:[%s518_s3 + $0x4] ss:$8 sps:$4 sm:$0xff]  }
   0x3   :  { %30 = vadd.xlane.f32.xlu0 %v29_v3  ;;  %36 = vadd.xlane.f32.xlu1 %v35_v4  ;;  %v38_v7 = vsel %vm28_vm0, %v27_v5, 0.0  ;;  %v334_v29 = vld [vmem:[%s518_s3] ss:$8 sps:$4 sm:$0xff]   ;;  %v335_v30 = vld [vmem:[%s518_s3 + $0x14] ss:$8 sps:$4 sm:$0xff]  }
   0x4   :  { %172 = vmatprep.subr.bf16.mxu0 %v332_v28  ;;  %322 = vmatprep.subr.bf16.mxu1 %v332_v28  ;;  %v337_v31 = vld [vmem:[%s518_s3 + $0x10] ss:$8 sps:$4 sm:$0xff]   ;;  %v338_v32 = vld [vmem:[%s518_s3 + $0x24] ss:$8 sps:$4 sm:$0xff]   ;;  %v340_v33 = vld [vmem:[%s518_s3 + $0x20] ss:$8 sps:$4 sm:$0xff]  }
   0x5   :  { %173 = vmatpush1.bf16.msra.mxu0 %v334_v29  ;;  %326 = vmatpush1.bf16.msra.mxu1 %v334_v29  ;;  %v341_v34 = vld [vmem:[%s518_s3 + $0x34] ss:$8 sps:$4 sm:$0xff]   ;;  %v343_v35 = vld [vmem:[%s518_s3 + $0x30] ss:$8 sps:$4 sm:$0xff]   ;;  %v294_v51 = vld [vmem:[%s519_s1] ss:$0 sm:$0xff] }
   0x6   :  { %174 = vmatprep.subr.bf16.mxu0 %v335_v30  ;;  %323 = vmatprep.subr.bf16.mxu1 %v335_v30  ;;  %v295_v57 = vld [vmem:[%s520_s2] ss:$0 sm:$0xff] }
   0x7   :  { %33 = vadd.xlane.f32.xlu0 %v32_v6  ;;  %39 = vadd.xlane.f32.xlu1 %v38_v7 }
   0x9   :  { %175 = vmatpush1.bf16.msra.mxu0 %v337_v31  ;;  %327 = vmatpush1.bf16.msra.mxu1 %v337_v31 }
   0xa   :  { %176 = vmatprep.subr.bf16.mxu0 %v338_v32  ;;  %324 = vmatprep.subr.bf16.mxu1 %v338_v32 }
   0xd   :  { %177 = vmatpush1.bf16.msra.mxu0 %v340_v33  ;;  %328 = vmatpush1.bf16.msra.mxu1 %v340_v33 }
   0xe   :  { %178 = vmatprep.subr.bf16.mxu0 %v341_v34  ;;  %325 = vmatprep.subr.bf16.mxu1 %v341_v34 }
  0x11   :  { %179 = vmatpush1.bf16.msra.mxu0 %v343_v35  ;;  %329 = vmatpush1.bf16.msra.mxu1 %v343_v35 }
  0x90   :  { %v31_v8 = vpop.xlane.xlu0 %30  ;;  %v37_v9 = vpop.xlane.xlu1 %36 }
  0x91   :  { %v42_v10 = vmul.f32 0.015625, %v31_v8  ;;  %v44_v11 = vmul.f32 0.015625, %v37_v9  ;;  %v114_v8 = vld [vmem:[%s521_s4] sm:$0x3]  ;;  %s353_s4 = smov 64  }
  0x93   :  { %v410_v12 = vsub.f32 %v24_v0, %v42_v10  ;;  %v412_v13 = vsub.f32 %v26_v1, %v44_v11 }
  0x94   :  { %v34_v14 = vpop.xlane.xlu0 %33  ;;  %v40_v15 = vpop.xlane.xlu1 %39 }
  0x95   :  { %v43_v16 = vmul.f32 0.015625, %v34_v14  ;;  %v45_v17 = vmul.f32 0.015625, %v40_v15  ;;  %v50_v18 = vmul.f32 %v410_v12, %v410_v12  ;;  %v52_v19 = vmul.f32 %v412_v13, %v412_v13 }
  0x97   :  { %v418_v20 = vsub.f32 %v25_v2, %v43_v16  ;;  %v420_v21 = vsub.f32 %v27_v5, %v45_v17  ;;  %v54_v22 = vsel %vm28_vm0, %v50_v18, 0.0  ;;  %v60_v23 = vsel %vm28_vm0, %v52_v19, 0.0 }
  0x98   :  { %55 = vadd.xlane.f32.xlu0 %v54_v22  ;;  %v116_v5 = vlaneseq }
  0x99   :  { %v51_v24 = vmul.f32 %v418_v20, %v418_v20  ;;  %v53_v25 = vmul.f32 %v420_v21, %v420_v21 }
  0x9a   :  { %v117_v6 = vshrl.u32 %v116_v5, 7 }
  0x9b   :  { %v57_v26 = vsel %vm28_vm0, %v51_v24, 0.0  ;;  %v63_v27 = vsel %vm28_vm0, %v53_v25, 0.0 }
  0x9c   :  { %61 = vadd.xlane.f32.xlu0 %v60_v23  ;;  %58 = vadd.xlane.f32.xlu1 %v57_v26  ;;  %v118_v7 = vsub.s32 0, %v117_v6  ;;  %v122_v9 = vsub.s32 1, %v117_v6 }
  0x9e   :  { %v119_v10 = vrot.slane %v114_v8, %v118_v7  ;;  %v123_v11 = vrot.slane %v114_v8, %v122_v9 }
  0xa0   :  { %64 = vadd.xlane.f32.xlu1 %v63_v27 }
 0x125   :  { %v56_v37 = vpop.xlane.xlu0 %55 }
 0x126   :  { %v66_v38 = vmul.f32 0.015625, %v56_v37 }
 0x128   :  { %v70_v39 = vadd.f32 1e-06, %v66_v38 }
 0x129   :  { %v59_v40 = vpop.xlane.xlu1 %58  ;;  %v62_v41 = vpop.xlane.xlu0 %61 }
 0x12a   :  { %344 = vrsqrt.f32 %v70_v39  ;;  %v67_v42 = vmul.f32 0.015625, %v59_v40  ;;  %v68_v43 = vmul.f32 0.015625, %v62_v41 }
 0x12c   :  { %v71_v44 = vadd.f32 1e-06, %v67_v42  ;;  %v72_v45 = vadd.f32 1e-06, %v68_v43 }
 0x12d   :  { %v65_v46 = vpop.xlane.xlu1 %64 }
 0x12e   :  { %346 = vrsqrt.f32 %v71_v44  ;;  %v69_v47 = vmul.f32 0.015625, %v65_v46 }
 0x12f   :  { %348 = vrsqrt.f32 %v72_v45 }
 0x130   :  { %v73_v48 = vadd.f32 1e-06, %v69_v47 }
 0x132   :  { %350 = vrsqrt.f32 %v73_v48 }
 0x134   :  { %v345_v49 = vpop.eup %344 }
 0x135   :  { %v78_v50 = vmul.f32 %v345_v49, %v410_v12 }
 0x137   :  { %v89_v55 = vmul.f32 %v294_v51, %v78_v50 }
 0x138   :  { %v347_v52 = vpop.eup %346 }
 0x139   :  { %v349_v53 = vpop.eup %348  ;;  %v79_v54 = vmul.f32 %v347_v52, %v418_v20  ;;  %v100_v61 = vadd.f32 %v295_v57, %v89_v55 }
 0x13a   :  { %v80_v56 = vmul.f32 %v349_v53, %v412_v13 }
 0x13b   :  { %v90_v58 = vmul.f32 %v294_v51, %v79_v54 }
 0x13c   :  { %v351_v59 = vpop.eup %350  ;;  %v91_v63 = vmul.f32 %v294_v51, %v80_v56 }
 0x13d   :  { %v81_v60 = vmul.f32 %v351_v59, %v420_v21  ;;  %v101_v62 = vadd.f32 %v295_v57, %v90_v58 }
 0x13e   :  { %v102_v2 = vadd.f32 %v295_v57, %v91_v63 }
 0x13f   :  { %v104_v0 = vpack.c.bf16 %v101_v62, %v100_v61  ;;  %v92_v1 = vmul.f32 %v294_v51, %v81_v60 }
 0x141   :  { %304 = vmatmul.mubr.msk.bf16.vlgmr.msra.gmra.mrb[0].mxu0 %vm28_vm0, %v104_v0  ;;  %v103_v3 = vadd.f32 %v295_v57, %v92_v1 }
 0x143   :  { %v105_v4 = vpack.c.bf16 %v103_v3, %v102_v2 }
 0x145   :  { %305 = vmatmul.mubr.msk.bf16.vlgmr.msra.gmra.mrb[0].mxu1 %vm28_vm0, %v105_v4 }
 0x214   :  { %v206_v12 = vpop.f32.mrb[0].mxu0 }
 0x215   :  { %v207_v13 = vadd.f32 %v206_v12, %v119_v10  ;;  %v208_v14 = vpop.f32.mrb[1].mxu0 }
 0x216   :  { %v209_v15 = vadd.f32 %v208_v14, %v123_v11  ;;  %v210_v16 = vpop.f32.mrb[2].mxu0 }
 0x217   :  { %v314_v17 = vpack.c.bf16 %v207_v13, %v207_v13  ;;  %v211_v18 = vadd.f32 %v210_v16, %v119_v10  ;;  %v212_v19 = vpop.f32.mrb[3].mxu0 }
 0x218   :  { %v318_v20 = vpack.c.bf16 %v209_v15, %v209_v15  ;;  %v213_v21 = vadd.f32 %v212_v19, %v123_v11  ;;  %v216_v22 = vpop.f32.mrb[0].mxu1 }
 0x219   :  { %242 = vst.msk [vmem:[%s522_s5] sm:$0xf] %vm241_vm1, %v314_v17  ;;  %v315_v23 = vpack.c.bf16 %v211_v18, %v211_v18  ;;  %v217_v24 = vadd.f32 %v216_v22, %v119_v10  ;;  %246 = vrot.lane.b32.xlu0 %v314_v17, %s353_s4  ;;  %v218_v25 = vpop.f32.mrb[1].mxu1 }
 0x21a   :  { %278 = vst.msk [vmem:[%s523_s7] sm:$0xf] %vm241_vm1, %v318_v20  ;;  %v319_v26 = vpack.c.bf16 %v213_v21, %v213_v21  ;;  %v219_v27 = vadd.f32 %v218_v25, %v123_v11  ;;  %v220_v28 = vpop.f32.mrb[2].mxu1 }
 0x21b   :  { %243 = vst.msk [vmem:[%s522_s5 + $0x4] sm:$0xf] %vm241_vm1, %v315_v23  ;;  %v316_v29 = vpack.c.bf16 %v217_v24, %v217_v24  ;;  %v221_v30 = vadd.f32 %v220_v28, %v119_v10  ;;  %v222_v31 = vpop.f32.mrb[3].mxu1 }
 0x21c   :  { %279 = vst.msk [vmem:[%s523_s7 + $0x4] sm:$0xf] %vm241_vm1, %v319_v26  ;;  %v320_v32 = vpack.c.bf16 %v219_v27, %v219_v27  ;;  %v223_v33 = vadd.f32 %v222_v31, %v123_v11 }
 0x21d   :  { %244 = vst.msk [vmem:[%s522_s5 + $0x8] sm:$0xf] %vm241_vm1, %v316_v29  ;;  %v317_v34 = vpack.c.bf16 %v221_v30, %v221_v30  ;;  %250 = vrot.lane.b32.xlu1 %v316_v29, %s353_s4 }
 0x21e   :  { %280 = vst.msk [vmem:[%s523_s7 + $0x8] sm:$0xf] %vm241_vm1, %v320_v32  ;;  %v321_v35 = vpack.c.bf16 %v223_v33, %v223_v33 }
 0x21f   :  { %245 = vst.msk [vmem:[%s522_s5 + $0xc] sm:$0xf] %vm241_vm1, %v317_v34 }
 0x220   :  { %281 = vst.msk [vmem:[%s523_s7 + $0xc] sm:$0xf] %vm241_vm1, %v321_v35 }
 0x221   :  { %248 = vrot.lane.b32.xlu1 %v315_v23, %s353_s4 }
 0x225   :  { %252 = vrot.lane.b32.xlu1 %v317_v34, %s353_s4 }
 0x28b   :  { %v247_v36 = vpop.permute.xlu0 %246 }
 0x28c   :  { %258 = vst.msk [vmem:[%s524_s6] sm:$0xf] %vm241_vm1, %v247_v36 }
 0x28f   :  { %v251_v37 = vpop.permute.xlu1 %250 }
 0x290   :  { %260 = vst.msk [vmem:[%s524_s6 + $0x8] sm:$0xf] %vm241_vm1, %v251_v37 }
 0x293   :  { %v249_v38 = vpop.permute.xlu1 %248 }
 0x294   :  { %259 = vst.msk [vmem:[%s524_s6 + $0x4] sm:$0xf] %vm241_vm1, %v249_v38 }
 0x297   :  { %v253_v39 = vpop.permute.xlu1 %252 }
 0x298   :  { %261 = vst.msk [vmem:[%s524_s6 + $0xc] sm:$0xf] %vm241_vm1, %v253_v39 }

// kernel: mhsa_forward.3
= control target key start
LH: loop header
LB: loop body
LE: loop exit
PB: predicated region body
PF: predicated region fallthrough
CT: control target
= control target key end

     0   :  { %11 = vsyncpa [#allocation6], 0  ;;  %s1581_s0 = inlined_call_operand.vmem [shape: f32[2,1,16], index: 0, kind: input, shape index: {}]   ;;  %s1582_s1 = inlined_call_operand.vmem [shape: bf16[2,16,64], index: 1, kind: input, shape index: {}]   ;;  %s1583_s2 = inlined_call_operand.vmem [shape: bf16[2,16,64], index: 2, kind: input, shape index: {}]   ;;  %s1584_s3 = inlined_call_operand.vmem [shape: bf16[2,16,64], index: 3, kind: input, shape index: {}]   ;;  %s1585_s4 = inlined_call_operand.vmem [shape: bf16[64,64], index: 4, kind: input, shape index: {}]   ;;  %s1586_s5 = inlined_call_operand.vmem [shape: f32[1,64], index: 5, kind: input, shape index: {}]   ;;  %s1587_s6 = inlined_call_operand.hbm [shape: f32[2,16,64], index: 6, kind: output, shape index: {}]  }
   0x1   :  { %13 = vsyncpa [#allocation6 + $0x1], 0  ;;  %s1350_s21 = smov 0   ;;  %s1352_s22 = smov 0  }
   0x2   :  { %s1354_s23 = smov 0   ;;  %s1356_s24 = smov 0  }
   0x3   :  { %s1358_s25 = smov 0   ;;  %s1360_s26 = smov 0  }
   0x4 LB: > { %s1047_s27 = sadd.s32 4294967295, %s1304_s26   ;;  %s1048_s28 = sadd.s32 4294967294, %s1304_s26   ;;  %s1304_s26 = sphi %s1360_s26, %s19_s26   ;;  %s1300_s25 = sphi %s1358_s25, %s1594_s25   ;;  %s1296_s24 = sphi %s1356_s24, %s1593_s24   ;;  %s1292_s23 = sphi %s1354_s23, %s1592_s23   ;;  %s1288_s22 = sphi %s1352_s22, %s1591_s22   ;;  %s1284_s21 = sphi %s1350_s21, %s1590_s21  }
   0x5   : > { %s38_s29 = sadd.s32 1, %s1300_s25  ;;  %s201_s30 = sadd.s32 1, %s1292_s23 }
   0x6   : > { %p40_p0 = scmp.ge.s32.totalorder %s38_s29, 2  ;;  %p211_p1 = scmp.ne.s32.totalorder %s1292_s23, %s1288_s22 }
   0x7   : > { %p212_p2 = scmp.eq.s32.totalorder %s1047_s27, 1  ;;  %p217_p3 = scmp.ne.s32.totalorder %s1288_s22, %s1284_s21 }
   0x8   : > { %s1596_s29 = smov (%p40_p0, %s38_s29), 0  ;;  %p218_p5 = scmp.eq.s32.totalorder %s1048_s28, 1 }
   0x9   : > { %p1390_p4 = por %p212_p2, %p211_p1  ;;  %s196_s8 = ssub.s32 %s1300_s25, %s1596_s29 }
   0xa   : > { %p1051_p6 = scmp.ge.s32.totalorder %s1304_s26, 1  ;;  %p199_p7 = scmp.eq.s32.totalorder %s196_s8, 0 }
   0xb   : > { %p1397_p8 = por %p218_p5, %p217_p3  ;;  %p290_p9 = scmp.lt.s32.totalorder %s1304_s26, 3 }
   0xc   : > { %s1403_s10 = scalar_select %p199_p7, %s1292_s23, %s201_s30  }
   0xd   : > { %p291_p10 = pnand %p1051_p6, %p290_p9 }
   0xe   : > { %p348_p11 = scmp.lt.s32.totalorder (!%p291_p10), %s1296_s24, 1  ;;  %v1306_v0 = vmov (!%p291_p10), 0.0   ;;  %vm1307_vm0 = vmmov (!%p291_p10), 0   ;;  %vm426_vm1 = vcmask (!%p291_p10), 261120   ;;  %s1308_s19 = smov (!%p291_p10), 96   ;;  %v411_v7 = vlaneseq (!%p291_p10) }
   0xf   : > { %294 = sbr.rel (%p291_p10) target bundleno = 1259 (0x4eb), region = 44  ;;  %1094 = vmatprep.subr.bf16.mxu0 (!%p291_p10), %v1306_v0  ;;  %1096 = vmatprep.mubr.msk.bf16.mxu0 (!%p291_p10), %vm1307_vm0, %v1306_v0  ;;  %vm390_vm2 = vcmask (!%p291_p10), 7168   ;;  %v1309_v12 = vmov (!%p291_p10), -1e+30   ;;  %vm476_vm3 = vcmask (!%p291_p10), 130048   ;;  %v1310_v22 = vmov (!%p291_p10), 0  }
  0x10   : > { %1106 = vmatprep.subr.bf16.mxu1 (!%p291_p10), %v1306_v0  ;;  %1108 = vmatprep.mubr.msk.bf16.mxu1 (!%p291_p10), %vm1307_vm0, %v1306_v0  ;;  %v412_v8 = vshrl.u32 (!%p291_p10), %v411_v7, 7  ;;  %391 = vst.msk [vmem:[#allocation2] sm:$0xff] (!%p291_p10), %vm390_vm2, %v1309_v12  ;;  %392 = vst.msk [vmem:[#allocation2 + $0x8] sm:$0xff] (!%p291_p10), %vm390_vm2, %v1309_v12  ;;  %vm399_vm4 = vcmask (!%p291_p10), 523264   ;;  %vm764_vm5 = vcmask (!%p291_p10), 523520   ;;  %s345_s27 = sand.u32 (!%p291_p10), 1, %s1288_s22  }
  0x11   : > { %393 = vst.msk [vmem:[#allocation2 + $0x10] sm:$0xff] (!%p291_p10), %vm390_vm2, %v1309_v12  ;;  %394 = vst.msk [vmem:[#allocation2 + $0x18] sm:$0xff] (!%p291_p10), %vm390_vm2, %v1309_v12  ;;  %1193 = vset.pattern.permute.xlu1 (!%p291_p10), %v1310_v22  ;;  %1194 = vset.pattern.permute.xlu0 (!%p291_p10), %v1310_v22  ;;  %s1080_s13 = sshll.u32 (!%p291_p10), %s1296_s24, 8 }
  0x12   : > { %v413_v11 = vsub.s32 (!%p291_p10), 0, %v412_v8  ;;  %395 = vst.msk [vmem:[#allocation3] sm:$0xff] (!%p291_p10), %vm390_vm2, %v1306_v0  ;;  %396 = vst.msk [vmem:[#allocation3 + $0x8] sm:$0xff] (!%p291_p10), %vm390_vm2, %v1306_v0  ;;  %s1531_s16 = scalar_lea.hbm (!%p291_p10), %s1587_s6, %s1080_s13 }
  0x13   : > { %397 = vst.msk [vmem:[#allocation3 + $0x10] sm:$0xff] (!%p291_p10), %vm390_vm2, %v1306_v0  ;;  %398 = vst.msk [vmem:[#allocation3 + $0x18] sm:$0xff] (!%p291_p10), %vm390_vm2, %v1306_v0 }
  0x14   : > { %401 = vst.msk [vmem:[#allocation4 + $0x8] sm:$0xff] (!%p291_p10), %vm399_vm4, %v1306_v0  ;;  %400 = vst.msk [vmem:[#allocation4] sm:$0xff] (!%p291_p10), %vm399_vm4, %v1306_v0 }
  0x16   : > { %s349_s11 = scalar_select %p348_p11, %s1296_s24, 1 }
  0x17   : > { %v1466_v32 = vld [vmem:[#allocation2] sm:$0xff]  ;;  %v475_v35 = vld [vmem:[#allocation2 + $0x8] sm:$0xff]  ;;  %s1535_s24 = scalar_lea.sflag [#allocation6], %s345_s27 }
  0x18   : > { %s1413_s12 = sshll.u32 %s349_s11, 3  ;;  %s353_s28 = scalar_lea.vmem %s1581_s0, %s349_s11  ;;  %v645_v40 = vld [vmem:[#allocation2 + $0x10] sm:$0xff]  ;;  %v646_v42 = vld [vmem:[#allocation2 + $0x18] sm:$0xff] }
  0x19   : > { %s372_s15 = scalar_lea.vmem %s1583_s2, %s1413_s12  ;;  %s362_s18 = scalar_lea.vmem %s1582_s1, %s1413_s12  ;;  %v408_v9 = vld [vmem:[%s353_s28] sm:$0x1] }
  0x1a   : > { %v1195_v1 = vld [vmem:[%s372_s15] sm:$0xff]   ;;  %v409_v10 = vmul.f32 -1e+30, %v408_v9  ;;  %s382_s11 = scalar_lea.vmem %s1584_s3, %s1413_s12  ;;  %s1311_s12 = smov 32  }
  0x1b   : > { %595 = vrot.lane.b32.xlu0 %v1195_v1, %s1308_s19  ;;  %v431_v2 = vsel %vm426_vm1, %v1195_v1, 0  ;;  %v1196_v3 = vld [vmem:[%s362_s18] sm:$0xff]   ;;  %s1052_s28 = sshll.u32 %s345_s27, 4  ;;  %s1312_s18 = smov [#allocation5]  }
  0x1c   : > { %1095 = vmatpush3.bf16.xpose.msra.mxu0 %v431_v2  ;;  %v414_v13 = vrot.slane %v409_v10, %v413_v11  ;;  %v1197_v31 = vld [vmem:[%s382_s11] sm:$0xff]   ;;  %s347_s11 = scalar_lea.vmem [#allocation5], %s1052_s28 }
  0x1d   : > { %1100 = vmatprep.subr.bf16.mxu0 %v1306_v0 }
  0x1f   : > { %593 = vrot.lane.b32.xlu0 %v1196_v3, %s1308_s19 }
  0x23   : > { %1097 = vmatmul.mubr.msk.bf16.vlgmr.msra.gmra.mrb[0].mxu0 %vm426_vm1, %v1196_v3 }
  0x24   : > { %1102 = vmatprep.mubr.msk.bf16.mxu0 %vm1307_vm0, %v1306_v0  ;;  %1101 = vmatpush3.bf16.msra.mxu0 %v1197_v31 }
  0x25   : > { %1112 = vmatprep.subr.bf16.mxu0 %v1306_v0 }
  0x8d   : > { %v596_v4 = vpop.permute.xlu0 %595 }
  0x8e   : > { %v601_v5 = vsel %vm426_vm1, %v596_v4, 0 }
  0x8f   : > { %1107 = vmatpush3.bf16.xpose.msra.mxu1 %v601_v5 }
  0x90   : > { %1118 = vmatprep.subr.bf16.mxu1 %v1306_v0 }
  0x91   : > { %v594_v6 = vpop.permute.xlu0 %593 }
  0x96   : > { %1109 = vmatmul.mubr.msk.bf16.vlgmr.msra.gmra.mrb[0].mxu1 %vm426_vm1, %v594_v6 }
  0x97   : > { %1126 = vmatprep.mubr.msk.bf16.mxu1 %vm1307_vm0, %v1306_v0 }
  0xf6   : > { %v467_v14 = vpop.f32.mrb[0].mxu0 }
  0xf7   : > { %v468_v15 = vadd.f32 %v467_v14, %v414_v13  ;;  %v1098_v16 = vpop.f32.mrb[1].mxu0 }
  0xf8   : > { %v470_v17 = vpop.f32.mrb[2].mxu0 }
  0xf9   : > { %v471_v18 = vadd.f32 %v470_v17, %v414_v13  ;;  %v477_v19 = vsel %vm476_vm3, %v468_v15, -inf  ;;  %v1099_v20 = vpop.f32.mrb[3].mxu0 }
  0xfa   : > { %478 = vmax.xlane.f32.xlu1 %v477_v19  ;;  %v507_v20 = vld [vmem:[#allocation3] sm:$0xff] }
  0xfb   : > { %v480_v21 = vsel %vm476_vm3, %v471_v18, -inf }
  0xfe   : > { %481 = vmax.xlane.f32.xlu1 %v480_v21 }
 0x169   : > { %v637_v23 = vpop.f32.mrb[0].mxu1 }
 0x16a   : > { %v1452_v24 = vadd.f32 %v637_v23, %v414_v13  ;;  %v1110_v25 = vpop.f32.mrb[1].mxu1 }
 0x16b   : > { %v640_v26 = vpop.f32.mrb[2].mxu1 }
 0x16c   : > { %v1454_v27 = vadd.f32 %v640_v26, %v414_v13  ;;  %v1111_v28 = vpop.f32.mrb[3].mxu1  ;;  %v647_v29 = vsel %vm476_vm3, %v1452_v24, -inf  ;;  %v574_v26 = vld [vmem:[#allocation4 + $0x8] sm:$0xff] }
 0x16d   : > { %648 = vmax.xlane.f32.xlu0 %v647_v29 }
 0x16e   : > { %v650_v30 = vsel %vm476_vm3, %v1454_v27, -inf }
 0x16f   : > { %651 = vmax.xlane.f32.xlu1 %v650_v30 }
 0x183   : > { %693 = vrot.lane.b32.xlu0 %v1197_v31, %s1308_s19  ;;  %s1230_s19 = sshll.u32 %s1312_s18, 4  ;;  %s1231_s19 = int_to_ptr.vmem [resolvable:$false] %s1230_s19 }
 0x184   : > { %s1232_s20 = scalar_lea.vmem %s1231_s19, 512 }
 0x187   : > { %v479_v33 = vpop.xlane.xlu1 %478 }
 0x188   : > { %v1469_v34 = vmax.f32 %v1466_v32, %v479_v33 }
 0x18a   : > { %v485_v36 = vsub.f32 %v1466_v32, %v1469_v34  ;;  %591 = vst.msk [vmem:[#allocation2] sm:$0xff] %vm390_vm2, %v1469_v34  ;;  %493 = vperm.xlu1 %1193, %v1469_v34   ;;  %v678_v34 = vld [vmem:[#allocation3 + $0x10] sm:$0xff] }
 0x18b   : > { %v482_v37 = vpop.xlane.xlu1 %481 }
 0x18c   : > { %v484_v38 = vmax.f32 %v475_v35, %v482_v37  ;;  %v487_v10 = vmul.f32 1.442695, %v485_v36  ;;  %v679_v37 = vld [vmem:[#allocation3 + $0x18] sm:$0xff] }
 0x18e   : > { %v486_v39 = vsub.f32 %v475_v35, %v484_v38  ;;  %592 = vst.msk [vmem:[#allocation2 + $0x8] sm:$0xff] %vm390_vm2, %v484_v38  ;;  %498 = vperm.xlu1 %1193, %v484_v38  }
 0x190   : > { %v489_v60 = vmul.f32 1.442695, %v486_v39 }
 0x1fa   : > { %v649_v41 = vpop.xlane.xlu0 %648 }
 0x1fb   : > { %v653_v43 = vmax.f32 %v645_v40, %v649_v41 }
 0x1fc   : > { %v652_v44 = vpop.xlane.xlu1 %651 }
 0x1fd   : > { %v655_v45 = vsub.f32 %v645_v40, %v653_v43  ;;  %767 = vst.msk [vmem:[#allocation2 + $0x10] sm:$0xff] %vm390_vm2, %v653_v43  ;;  %v654_v46 = vmax.f32 %v646_v42, %v652_v44  ;;  %663 = vperm.xlu1 %1193, %v653_v43  }
 0x1fe   : > { %v694_v58 = vpop.permute.xlu0 %693 }
 0x1ff   : > { %v656_v47 = vsub.f32 %v646_v42, %v654_v46  ;;  %768 = vst.msk [vmem:[#allocation2 + $0x18] sm:$0xff] %vm390_vm2, %v654_v46  ;;  %v657_v11 = vmul.f32 1.442695, %v655_v45  ;;  %v573_v42 = vld [vmem:[#allocation4] sm:$0xff] }
 0x201   : > { %668 = vperm.xlu1 %1193, %v654_v46   ;;  %v659_v12 = vmul.f32 1.442695, %v656_v47 }
 0x209   : > { %v494_v48 = vpop.permute.xlu1 %493 }
 0x20a   : > { %v501_v49 = vsub.f32 %v468_v15, %v494_v48  ;;  %v508_v15 = vld [vmem:[#allocation3 + $0x8] sm:$0xff] }
 0x20c   : > { %v503_v50 = vmul.f32 1.442695, %v501_v49 }
 0x20d   : > { %v499_v51 = vpop.permute.xlu1 %498 }
 0x20e   : > { %v502_v52 = vsub.f32 %v471_v18, %v499_v51  ;;  %1202 = vpow2.f32 %v503_v50 }
 0x210   : > { %v505_v53 = vmul.f32 1.442695, %v502_v52 }
 0x212   : > { %1204 = vpow2.f32 %v505_v53 }
 0x213   : > { %1206 = vpow2.f32 %v489_v60 }
 0x218   : > { %v1203_v54 = vpop.eup %1202 }
 0x219   : > { %v511_v59 = vsel %vm476_vm3, %v1203_v54, 0.0 }
 0x21c   : > { %v1205_v55 = vpop.eup %1204 }
 0x21d   : > { %v514_v56 = vsel %vm476_vm3, %v1205_v55, 0.0  ;;  %v522_v57 = vpack.c.bf16 %v1205_v55, %v1203_v54  ;;  %v1207_v61 = vpop.eup %1206  ;;  %v1198_v55 = vld [vmem:[%s1585_s4] sm:$0xff]  }
 0x21e   : > { %515 = vadd.xlane.f32.xlu0 %v514_v56  ;;  %v510_v17 = vmul.f32 %v1207_v61, %v508_v15  ;;  %1119 = vmatpush3.bf16.msra.mxu1 %v1198_v55 }
 0x21f   : > { %1103 = vmatmul.mubr.msk.bf16.vlgmr.msra.gmra.mrb[4].mxu0 %vm476_vm3, %v522_v57  ;;  %1120 = vmatprep.subr.bf16.mxu1 %v1306_v0  ;;  %v1199_v57 = vld [vmem:[%s1585_s4 + $0x8] sm:$0xff]  }
 0x220   : > { %1113 = vmatpush3.bf16.msra.mxu0 %v694_v58  ;;  %1114 = vmatprep.mubr.msk.bf16.mxu0 %vm1307_vm0, %v1306_v0  ;;  %v1200_v58 = vld [vmem:[%s1585_s4 + $0x10] sm:$0xff]  }
 0x222   : > { %1121 = vmatpush3.bf16.msra.mxu1 %v1199_v57 }
 0x223   : > { %1122 = vmatprep.subr.bf16.mxu1 %v1306_v0 }
 0x225   : > { %512 = vadd.xlane.f32.xlu1 %v511_v59  ;;  %v1201_v59 = vld [vmem:[%s1585_s4 + $0x18] sm:$0xff]  }
 0x226   : > { %1123 = vmatpush3.bf16.msra.mxu1 %v1200_v58 }
 0x227   : > { %1124 = vmatprep.subr.bf16.mxu1 %v1306_v0 }
 0x22a   : > { %1125 = vmatpush3.bf16.msra.mxu1 %v1201_v59 }
 0x234   : > { %582 = vperm.xlu0 %1194, %v1207_v61  }
 0x27c   : > { %v664_v62 = vpop.permute.xlu1 %663 }
 0x27d   : > { %v671_v63 = vsub.f32 %v1452_v24, %v664_v62 }
 0x27f   : > { %v673_v1 = vmul.f32 1.442695, %v671_v63 }
 0x280   : > { %v669_v2 = vpop.permute.xlu1 %668 }
 0x281   : > { %1208 = vpow2.f32 %v673_v1  ;;  %v672_v3 = vsub.f32 %v1454_v27, %v669_v2 }
 0x283   : > { %v675_v4 = vmul.f32 1.442695, %v672_v3 }
 0x285   : > { %1210 = vpow2.f32 %v675_v4 }
 0x286   : > { %1212 = vpow2.f32 %v487_v10 }
 0x287   : > { %1214 = vpow2.f32 %v657_v11 }
 0x288   : > { %1216 = vpow2.f32 %v659_v12 }
 0x28b   : > { %v1209_v5 = vpop.eup %1208 }
 0x28c   : > { %v682_v6 = vsel %vm476_vm3, %v1209_v5, 0.0 }
 0x28d   : > { %683 = vadd.xlane.f32.xlu1 %v682_v6 }
 0x28f   : > { %v1211_v7 = vpop.eup %1210 }
 0x290   : > { %v685_v8 = vsel %vm476_vm3, %v1211_v7, 0.0  ;;  %v692_v9 = vpack.c.bf16 %v1211_v7, %v1209_v5  ;;  %v1213_v13 = vpop.eup %1212 }
 0x291   : > { %686 = vadd.xlane.f32.xlu1 %v685_v8  ;;  %v1215_v14 = vpop.eup %1214  ;;  %v509_v21 = vmul.f32 %v1213_v13, %v507_v20 }
 0x292   : > { %1115 = vmatmul.mubr.msk.bf16.vlgmr.msra.gmra.mrb[8].mxu0 %vm476_vm3, %v692_v9  ;;  %v1217_v16 = vpop.eup %1216  ;;  %v680_v35 = vmul.f32 %v1215_v14, %v678_v34 }
 0x293   : > { %v681_v39 = vmul.f32 %v1217_v16, %v679_v37 }
 0x2a2   : > { %577 = vperm.xlu1 %1193, %v1213_v13  }
 0x2a6   : > { %744 = vperm.xlu1 %1193, %v1215_v14  }
 0x2aa   : > { %749 = vperm.xlu1 %1193, %v1217_v16  }
 0x2ab   : > { %v516_v18 = vpop.xlane.xlu0 %515 }
 0x2ac   : > { %v518_v19 = vadd.f32 %v516_v18, %v510_v17 }
 0x2ae   : > { %521 = vst.msk [vmem:[#allocation3 + $0x8] sm:$0xff] %vm390_vm2, %v518_v19 }
 0x2b2   : > { %v513_v22 = vpop.xlane.xlu1 %512 }
 0x2b3   : > { %v517_v23 = vadd.f32 %v513_v22, %v509_v21  ;;  %v583_v27 = vpop.permute.xlu0 %582  ;;  %v1066_v21 = vld [vmem:[%s1586_s5] ss:$0 sm:$0xff] }
 0x2b4   : > { %v586_v29 = vmul.f32 %v583_v27, %v574_v26 }
 0x2b5   : > { %520 = vst.msk [vmem:[#allocation3] sm:$0xff] %vm390_vm2, %v517_v23  ;;  %v773_v46 = vld [vmem:[#allocation3 + $0x8] sm:$0xff] }
 0x2bc   : > { %v772_v24 = vld [vmem:[#allocation3] sm:$0xff] }
 0x2bd   : > { %1218 = vrcp.f32 %v772_v24 }
 0x2be   : > { %1220 = vrcp.f32 %v773_v46 }
 0x2c7   : > { %v1219_v25 = vpop.eup %1218 }
 0x2c8   : > { %780 = vperm.xlu1 %1193, %v1219_v25   ;;  %v1221_v53 = vpop.eup %1220 }
 0x2f2   : > { %v566_v28 = vpop.f32.mrb[4].mxu0 }
 0x2f3   : > { %v1104_v30 = vpop.f32.mrb[5].mxu0 }
 0x2f4   : > { %v569_v31 = vpop.f32.mrb[6].mxu0 }
 0x2f5   : > { %v588_v32 = vadd.f32 %v586_v29, %v569_v31  ;;  %v1105_v33 = vpop.f32.mrb[7].mxu0 }
 0x2f7   : > { %590 = vst.msk [vmem:[#allocation4 + $0x8] sm:$0xff] %vm426_vm1, %v588_v32 }
 0x2fe   : > { %v741_v4 = vld [vmem:[#allocation4 + $0x8] sm:$0xff] }
 0x31a   : > { %v684_v36 = vpop.xlane.xlu1 %683 }
 0x31b   : > { %v688_v38 = vadd.f32 %v684_v36, %v680_v35 }
 0x31d   : > { %690 = vst.msk [vmem:[#allocation3 + $0x10] sm:$0xff] %vm390_vm2, %v688_v38 }
 0x31e   : > { %v687_v40 = vpop.xlane.xlu1 %686 }
 0x31f   : > { %v689_v41 = vadd.f32 %v687_v40, %v681_v39 }
 0x321   : > { %691 = vst.msk [vmem:[#allocation3 + $0x18] sm:$0xff] %vm390_vm2, %v689_v41 }
 0x322   : > { %v578_v43 = vpop.permute.xlu1 %577 }
 0x323   : > { %v585_v44 = vmul.f32 %v578_v43, %v573_v42 }
 0x324   : > { %v792_v47 = vld [vmem:[#allocation3 + $0x10] sm:$0xff] }
 0x325   : > { %v587_v45 = vadd.f32 %v585_v44, %v566_v28  ;;  %1222 = vrcp.f32 %v792_v47 }
 0x326   : > { %v745_v60 = vpop.permute.xlu1 %744 }
 0x327   : > { %589 = vst.msk [vmem:[#allocation4] sm:$0xff] %vm426_vm1, %v587_v45 }
 0x328   : > { %v793_v52 = vld [vmem:[#allocation3 + $0x18] sm:$0xff] }
 0x329   : > { %1224 = vrcp.f32 %v793_v52 }
 0x32a   : > { %v750_v61 = vpop.permute.xlu1 %749 }
 0x32b   : > { %v753_v5 = vmul.f32 %v750_v61, %v741_v4 }
 0x32e   : > { %v740_v62 = vld [vmem:[#allocation4] sm:$0xff] }
 0x32f   : > { %v1223_v54 = vpop.eup %1222  ;;  %v752_v1 = vmul.f32 %v745_v60, %v740_v62 }
 0x333   : > { %v1225_v56 = vpop.eup %1224 }
 0x347   : > { %v781_v63 = vpop.permute.xlu1 %780 }
 0x365   : > { %v733_v48 = vpop.f32.mrb[8].mxu0 }
 0x366   : > { %v1116_v49 = vpop.f32.mrb[9].mxu0  ;;  %756 = vrot.lane.b32.xlu1 %v733_v48, %s1311_s12 }
 0x367   : > { %v736_v50 = vpop.f32.mrb[10].mxu0 }
 0x368   : > { %v1117_v51 = vpop.f32.mrb[11].mxu0 }
 0x36a   : > { %758 = vrot.lane.b32.xlu1 %v736_v50, %s1311_s12  ;;  %s917_s12 = sshll.u32 %s347_s11, 4  ;;  %s1526_s12 = int_to_ptr.vmem [resolvable:$true] %s917_s12 }
 0x36b   : > { %s1226_s17 = scalar_lea.vmem %s1526_s12, 256  ;;  %p1233_p1 = scmp.lt.s32.totalorder %s1526_s12, %s1231_s19 }
 0x36c   : > { %p1227_p12 = scmp.ne.s32.totalorder %s1526_s12, %s1226_s17  ;;  %p1234_p2 = scmp.lt.s32.totalorder %s1232_s20, %s1226_s17 }
 0x36e   : > { %785 = vperm.xlu1 %1193, %v1221_v53   ;;  %p1228_p13 = pnand %p1227_p12, %p1390_p4  ;;  %p1235_p3 = por %p1234_p2, %p1233_p1 }
 0x370   : > { %p1229_p0 = pneg %p1228_p13 }
 0x372   : > { %800 = vperm.xlu1 %1193, %v1223_v54   ;;  %p1236_p5 = pnand %p1235_p3, %p1229_p0 }
 0x376   : > { %805 = vperm.xlu1 %1193, %v1225_v56  }
 0x3d8   : > { %v757_v2 = vpop.permute.xlu1 %756 }
 0x3d9   : > { %v762_v3 = vadd.f32 %v757_v2, %v752_v1 }
 0x3db   : > { %765 = vst.msk [vmem:[#allocation4] sm:$0xff] %vm764_vm5, %v762_v3 }
 0x3dc   : > { %v759_v6 = vpop.permute.xlu1 %758 }
 0x3dd   : > { %v763_v7 = vadd.f32 %v759_v6, %v753_v5 }
 0x3df   : > { %766 = vst.msk [vmem:[#allocation4 + $0x8] sm:$0xff] %vm764_vm5, %v763_v7 }
 0x3e2   : > { %v776_v8 = vld [vmem:[#allocation4] sm:$0xff] }
 0x3e3   : > { %v788_v9 = vmul.f32 %v781_v63, %v776_v8 }
 0x3e5   : > { %790 = vst.msk [vmem:[#allocation4] sm:$0xff] %vm426_vm1, %v788_v9 }
 0x3e6   : > { %v777_v0 = vld [vmem:[#allocation4 + $0x8] sm:$0xff] }
 0x3ec   : > { %v796_v12 = vld [vmem:[#allocation4] sm:$0xff] }
 0x3ed   : > { %v786_v10 = vpop.permute.xlu1 %785 }
 0x3ee   : > { %v789_v11 = vmul.f32 %v786_v10, %v777_v0 }
 0x3f0   : > { %791 = vst.msk [vmem:[#allocation4 + $0x8] sm:$0xff] %vm426_vm1, %v789_v11 }
 0x3f1   : > { %v801_v13 = vpop.permute.xlu1 %800 }
 0x3f2   : > { %v808_v14 = vmul.f32 %v801_v13, %v796_v12 }
 0x3f4   : > { %810 = vst.msk [vmem:[#allocation4] sm:$0xff] %vm764_vm5, %v808_v14 }
 0x3f5   : > { %v806_v16 = vpop.permute.xlu1 %805 }
 0x3f7   : > { %v797_v15 = vld [vmem:[#allocation4 + $0x8] sm:$0xff] }
 0x3f8   : > { %v809_v17 = vmul.f32 %v806_v16, %v797_v15 }
 0x3fa   : > { %811 = vst.msk [vmem:[#allocation4 + $0x8] sm:$0xff] %vm764_vm5, %v809_v17 }
 0x3fb   : > { %v812_v18 = vld [vmem:[#allocation4] sm:$0xff] }
 0x401   : > { %v813_v19 = vld [vmem:[#allocation4 + $0x8] sm:$0xff] }
 0x402   : > { %v814_v20 = vpack.c.bf16 %v813_v19, %v812_v18 }
 0x404   : > { %1127 = vmatmul.mubr.msk.bf16.vlgmr.msra.gmra.mrb[4].mxu1 %vm399_vm4, %v814_v20 }
 0x4d7   : > { %v892_v22 = vpop.f32.mrb[4].mxu1 }
 0x4d8   : > { %v893_v23 = vadd.f32 %v1066_v21, %v892_v22  ;;  %v1128_v24 = vpop.f32.mrb[5].mxu1 }
 0x4d9   : > { %v895_v25 = vpop.f32.mrb[6].mxu1 }
 0x4da   : > { %899 = vst.msk [vmem:[%s347_s11] sm:$0xff] %vm399_vm4, %v893_v23  ;;  %v896_v26 = vadd.f32 %v1066_v21, %v895_v25  ;;  %v1129_v27 = vpop.f32.mrb[7].mxu1 }
 0x4dc   : > { %900 = vst.msk [vmem:[%s347_s11 + $0x8] sm:$0xff] %vm399_vm4, %v896_v26 }
 0x4dd   : > { %1239 = shalt.err (!%p1236_p5)
}
 0x4de   : > { %s1240_s27 = scalar_lea.hbm %s1531_s16, 256  ;;  %s1244_s8 = scalar_lea.hbm %s1587_s6, 512 }
 0x4df   : > { %p1241_p6 = scmp.ne.s32.totalorder %s1531_s16, %s1240_s27  ;;  %p1245_p10 = scmp.lt.u32.totalorder %s1531_s16, %s1587_s6 }
 0x4e0   : > { %p1246_p11 = scmp.lt.u32.totalorder %s1244_s8, %s1240_s27  ;;  %p1248_p13 = scmp.lt.u32.totalorder %s1240_s27, %s1531_s16 }
 0x4e1   : > { %p1242_p7 = pnand %p1241_p6, %p1390_p4 }
 0x4e2   : > { %p1247_p12 = por %p1246_p11, %p1245_p10 }
 0x4e3   : > { %p1243_p9 = pneg %p1242_p7 }
 0x4e4   : > { %p1249_p0 = por %p1248_p13, %p1247_p12 }
 0x4e6   : > { %p1250_p1 = pnand %p1249_p0, %p1243_p9 }
 0x4e8   : > { %1253 = shalt.err (!%p1250_p1)
}
 0x4e9   : > { %s1313_s14 = smov 128   ;;  %s1314_s15 = smov 8  }
 0x4ea   : > { %1130 = dma.vmem_to_hbm [thread:$0]  (%p1390_p4), %s1526_s12, 256, %s1531_s16, %s1535_s24, %s1313_s14, %s1313_s14, %s1314_s15  }
 0x4eb PF: > { %p1136_p2 = scmp.ge.s32.totalorder %s1304_s26, 2  ;;  %s932_s17 = sand.u32 1, %s1284_s21  }
 0x4ec   : > { %s933_s18 = scalar_lea.sflag [#allocation6], %s932_s17 }
 0x4ed   : > { %p1133_p3 = pnand %p1136_p2, %p1397_p8 }
 0x4ef   : > { %1279 = dma.done.wait (!%p1133_p3), %s933_s18, 256  }
 0x4f0   : > { %1281 = vsyncadd (!%p1133_p3), %s933_s18, 4294967040  ;;  %s19_s26 = sadd.s32 1, %s1304_s26   ;;  %s1590_s21 = smov %s1288_s22 }
 0x4f1   : > { %p16_p5 = scmp.ge.s32.totalorder %s19_s26, 4   ;;  %s1591_s22 = smov %s1292_s23 }
 0x4f2   : > { %s1592_s23 = smov %s1403_s10  ;;  %s1593_s24 = smov %s1300_s25 }
 0x4f3   : > { %s1594_s25 = smov %s1596_s29  ;;  %18 = sbr.rel (!%p16_p5) target bundleno = 4 (0x4), region = 98 }
 0x4fa   :  { %938 = vsyncpa [#allocation6], 1 }
 0x4fb   :  { %940 = vsyncpa [#allocation6 + $0x1], 1 }

</bundles_post_ra>
